<compile_context>
chip_gen: v7x
topology: tpu7x:2x2x1
jax: 0.10.0
libtpu: 0.0.40
codegen_flags: <defaults>
</compile_context>

<pallas_src>
import jax
import jax.numpy as jnp
from jax.experimental import pallas as pl
from jax.experimental.pallas import tpu as pltpu

# ----- small, module-consistent sizes (original: D=300, HID=512) -------------
D = 32         # feature_size == class_size (rel_dict embedding dim)
HID = 64       # hidden width AND CVAE latent (output_size) -- was 512 in PyTorch
TOPK = 2
DISK = 15
DP = 16        # DISK padded to a sublane-friendly 16
LANES = 128    # every activation / weight is padded to 128 lanes
T_MOCO = 0.07
SLOPE = 0.2    # LeakyReLU negative slope

# indices into the packed weight / bias stacks
W_FC1, W_FMU, W_FLS, W_FC3Z, W_FC3Y, W_FC4 = 0, 1, 2, 3, 4, 5
W_Z1, W_Z2, W_I1, W_I2, W_K1, W_K2 = 6, 7, 8, 9, 10, 11
N_W = 12


def _leaky_relu(x):
    return jnp.where(x >= 0, x, SLOPE * x)


def _relu(x):
    return jnp.maximum(x, 0.0)


# ------------------------------ Pallas kernel --------------------------------
def reason_kernel(data_ref, neg_ref, w_ref, b_ref, loss_ref, z_ref):
    f32 = jnp.float32
    B = z_ref.shape[0]
    BDP = neg_ref.shape[0]

    xy = data_ref[0]      # (B, 128)  [x | y | 0]
    x = data_ref[1]       # (B, 128)  [x | 0]
    y = data_ref[2]       # (B, 128)  [y | 0]
    eps1 = data_ref[3]    # (B, 128)  [eps1 | 0]
    eps2 = data_ref[4]    # (B, 128)  [eps2 | 0]
    neg = neg_ref[...]    # (B*DP, 128)

    def lin(h, i):
        return jnp.dot(h, w_ref[i], preferred_element_type=f32) + b_ref[i]

    # ---- CVAE encode: fc1 on pre-concatenated [x|y], then mu / log_std
    h1 = _leaky_relu(lin(xy, W_FC1))
    mu = lin(h1, W_FMU)                    # padding lanes stay exactly 0
    log_std = lin(h1, W_FLS)
    std = jnp.exp(log_std)                 # padding lanes become 1 (cancels in KL)

    # ---- reparametrize (first draw) + decode
    z = mu + eps1 * std
    h3 = _leaky_relu(jnp.dot(z, w_ref[W_FC3Z], preferred_element_type=f32)
                     + jnp.dot(y, w_ref[W_FC3Y], preferred_element_type=f32)
                     + b_ref[W_FC3Z])
    recon = jnp.tanh(lin(h3, W_FC4))

    # ---- CVAE loss over the whole batch (padding lanes contribute exactly 0)
    recon_loss = jnp.sum((recon - x) ** 2, keepdims=True)                       # (1,1)
    kl = jnp.sum(-0.5 * (1.0 + 2.0 * log_std - mu * mu - std * std),
                 keepdims=True)                                                 # (1,1)
    loss_vae = recon_loss + kl

    # ---- MoCo: second reparam draw, query/key encoders, contrastive CE
    z_ = mu + eps2 * std
    zp = _relu(lin(_relu(lin(z_, W_Z1)), W_Z2))       # (B, 128)
    pv = _relu(lin(_relu(lin(x, W_I1)), W_I2))        # (B, 128)
    npv = _relu(lin(_relu(lin(neg, W_K1)), W_K2))     # (B*DP, 128)

    inv_t = 1.0 / T_MOCO
    pos_logit = jnp.sum(zp * pv, axis=1, keepdims=True) * inv_t                 # (B, 1)
    all_neg = jax.lax.dot_general(zp, npv, (((1,), (1,)), ((), ())),
                                  preferred_element_type=f32) * inv_t           # (B, B*DP)

    # block-diagonal mask: row b only sees its own DISK (15 of 16 padded) negatives
    col = jax.lax.broadcasted_iota(jnp.int32, (B, BDP), 1)
    row = jax.lax.broadcasted_iota(jnp.int32, (B, BDP), 0)
    valid = (col >= row * DP) & (col < row * DP + DISK)
    neg_logits = jnp.where(valid, all_neg, -1e30)

    # cross-entropy with label 0 == logsumexp(all) - pos_logit
    m = jnp.maximum(pos_logit, jnp.max(neg_logits, axis=1, keepdims=True))
    sum_exp = jnp.exp(pos_logit - m) + jnp.sum(jnp.exp(neg_logits - m),
                                               axis=1, keepdims=True)
    lse = m + jnp.log(sum_exp)                                                  # (B, 1)
    loss_csl = jnp.sum(lse - pos_logit, keepdims=True)                          # (1, 1)

    # ---- lane-dense outputs, written exactly once
    lane = jax.lax.broadcasted_iota(jnp.int32, (1, LANES), 1)
    loss_ref[...] = (jnp.where(lane == 0, loss_vae, 0.0)
                     + jnp.where(lane == 1, loss_csl, 0.0))
    z_ref[...] = zp


def reason_pallas(data, neg, w_stack, b_stack):
    B = data.shape[1]
    vmem = pl.BlockSpec(memory_space=pltpu.MemorySpace.VMEM)
    out_shape = (jax.ShapeDtypeStruct((1, LANES), jnp.float32),   # [loss_vae, loss_csl, 0...]
                 jax.ShapeDtypeStruct((B, LANES), jnp.float32))   # zp (lanes >= HID are zero)
    return pl.pallas_call(
        reason_kernel,
        out_shape=out_shape,
        in_specs=[vmem, vmem, vmem, vmem],
        out_specs=(vmem, vmem),
    )(data, neg, w_stack, b_stack)


# --------------------------- packing helpers (JAX) ----------------------------
def _pad_lanes(a, lanes=LANES):
    r, c = a.shape
    return jnp.zeros((r, lanes), jnp.float32).at[:, :c].set(a)


def _pad_weight(w, lanes=LANES):
    r, c = w.shape
    return jnp.zeros((lanes, lanes), jnp.float32).at[:r, :c].set(w)


def pack_params(weights):
    (fc1_w, fc1_b, fmu_w, fmu_b, fls_w, fls_b, fc3_w, fc3_b, fc4_w, fc4_b,
     z1_w, z1_b, z2_w, z2_b, i1_w, i1_b, i2_w, i2_b, k1_w, k1_b, k2_w, k2_b) = weights
    ws = [fc1_w, fmu_w, fls_w, fc3_w[:HID], fc3_w[HID:], fc4_w,
          z1_w, z2_w, i1_w, i2_w, k1_w, k2_w]
    bs = [fc1_b, fmu_b, fls_b, fc3_b, jnp.zeros((1, HID), jnp.float32), fc4_b,
          z1_b, z2_b, i1_b, i2_b, k1_b, k2_b]
    w_stack = jnp.stack([_pad_weight(w) for w in ws])        # (12, 128, 128)
    b_stack = jnp.stack([_pad_lanes(b) for b in bs])         # (12, 1, 128)
    return w_stack, b_stack


# ------------------------------ glue (plain JAX) ------------------------------
def reason_forward(logits, rels, rel_dict, weights, key):
    B = logits.shape[0]
    # TODO(synk): sort + gather stay in plain JAX (no clean Pallas TPU equivalent).
    desc = jnp.argsort(-logits, axis=1)
    asc = jnp.argsort(logits, axis=1)
    rel_keys = rels[:, 1]

    pos1 = rel_dict[rel_keys[desc[:, 0]]]                    # (B, D)
    pos2 = rel_dict[rel_keys[desc[:, 1]]]                    # (B, D)
    neg = rel_dict[rel_keys[asc[:, :DISK]]]                  # (B, DISK, D)

    k1, k2 = jax.random.split(key)
    eps1 = jax.random.normal(k1, (B, HID), jnp.float32)      # reparam draw inside ae()
    eps2 = jax.random.normal(k2, (B, HID), jnp.float32)      # second reparam draw (z_)

    xy = jnp.concatenate([pos1, pos2], axis=1)               # pre-concat -> single fc1 dot
    data = jnp.stack([_pad_lanes(xy), _pad_lanes(pos1), _pad_lanes(pos2),
                      _pad_lanes(eps1), _pad_lanes(eps2)])   # (5, B, 128)
    neg_pad = (jnp.zeros((B, DP, LANES), jnp.float32)
               .at[:, :DISK, :D].set(neg)
               .reshape(B * DP, LANES))                      # (B*16, 128)

    w_stack, b_stack = pack_params(weights)
    losses, zp = reason_pallas(data, neg_pad, w_stack, b_stack)
    loss_vae = losses[0, 0:1]
    loss_csl = losses[0, 1:2]
    z_rel = jnp.concatenate([jnp.zeros((1, HID), jnp.float32), zp[:, :HID]], axis=0)
    return loss_vae, loss_csl, z_rel


# ---------------------------- pure-JAX reference ------------------------------
def reason_reference(pos1, pos2, neg, eps1, eps2, weights):
    (fc1_w, fc1_b, fmu_w, fmu_b, fls_w, fls_b, fc3_w, fc3_b, fc4_w, fc4_b,
     z1_w, z1_b, z2_w, z2_b, i1_w, i1_b, i2_w, i2_b, k1_w, k1_b, k2_w, k2_b) = weights
    B = pos1.shape[0]
    lvae = jnp.zeros(())
    lcsl = jnp.zeros(())
    zs = []
    for b in range(B):
        x, y = pos1[b:b + 1], pos2[b:b + 1]
        ng = neg[b]
        e1, e2 = eps1[b:b + 1], eps2[b:b + 1]
        h1 = _leaky_relu(jnp.concatenate([x, y], 1) @ fc1_w + fc1_b)
        mu = h1 @ fmu_w + fmu_b
        ls = h1 @ fls_w + fls_b
        std = jnp.exp(ls)
        z = mu + e1 * std
        h3 = _leaky_relu(jnp.concatenate([z, y], 1) @ fc3_w + fc3_b)
        recon = jnp.tanh(h3 @ fc4_w + fc4_b)
        lvae += jnp.sum((recon - x) ** 2) + jnp.sum(
            -0.5 * (1 + 2 * ls - mu ** 2 - jnp.exp(2 * ls)))
        z_ = mu + e2 * std
        zp = _relu(_relu(z_ @ z1_w + z1_b) @ z2_w + z2_b)
        pv = _relu(_relu(x @ i1_w + i1_b) @ i2_w + i2_b)
        npv = _relu(_relu(ng @ k1_w + k1_b) @ k2_w + k2_b)
        lg = jnp.concatenate([jnp.sum(zp * pv)[None], (zp @ npv.T)[0]]) / T_MOCO
        lcsl += jax.nn.logsumexp(lg) - lg[0]
        zs.append(zp)
    z_rel = jnp.concatenate([jnp.zeros((1, HID), jnp.float32)] + zs, axis=0)
    return jnp.array([lvae]), jnp.array([lcsl]), z_rel


def init_linear(key, fan_in, fan_out):
    kw, kb = jax.random.split(key)
    bound = 1.0 / float(fan_in) ** 0.5
    w = jax.random.uniform(kw, (fan_in, fan_out), jnp.float32, -bound, bound)
    b = jax.random.uniform(kb, (1, fan_out), jnp.float32, -bound, bound)
    return w, b


if __name__ == "__main__":
    root = jax.random.PRNGKey(0)
    keys = jax.random.split(root, 16)

    # deterministic parameter init (CVAE + MoCo)
    fc1_w, fc1_b = init_linear(keys[0], 2 * D, HID)           # CVAE fc1
    fmu_w, fmu_b = init_linear(keys[1], HID, HID)             # fc2_mu
    fls_w, fls_b = init_linear(keys[2], HID, HID)             # fc2_log_std
    fc3_w, fc3_b = init_linear(keys[3], HID + D, HID)         # fc3
    fc4_w, fc4_b = init_linear(keys[4], HID, D)               # fc4
    z1_w, z1_b = init_linear(keys[5], HID, HID)               # MoCo encoder_z
    z2_w, z2_b = init_linear(keys[6], HID, HID)
    i1_w, i1_b = init_linear(keys[7], D, HID)                 # MoCo encoder_inp
    i2_w, i2_b = init_linear(keys[8], HID, HID)
    k1_w, k1_b, k2_w, k2_b = i1_w, i1_b, i2_w, i2_b           # encoder_k == encoder_inp

    weights = (fc1_w, fc1_b, fmu_w, fmu_b, fls_w, fls_b, fc3_w, fc3_b, fc4_w, fc4_b,
               z1_w, z1_b, z2_w, z2_b, i1_w, i1_b, i2_w, i2_b, k1_w, k1_b, k2_w, k2_b)

    # deterministic inputs
    B, R, K = 2, 16, 16
    logits = jax.random.normal(keys[9], (B, R), jnp.float32)
    rels = jax.random.randint(keys[10], (R, 3), 0, K, jnp.int32)
    rel_dict = jax.random.normal(keys[11], (K, D), jnp.float32)
    noise_key = keys[12]

    fwd = jax.jit(reason_forward)
    loss_vae, loss_csl, z_rel = fwd(logits, rels, rel_dict, weights, noise_key)
    jax.block_until_ready((loss_vae, loss_csl, z_rel))

    # correctness check against a pure-JAX reference (same gathered inputs / noise)
    desc = jnp.argsort(-logits, axis=1)
    asc = jnp.argsort(logits, axis=1)
    rel_keys_arr = rels[:, 1]
    p1 = rel_dict[rel_keys_arr[desc[:, 0]]]
    p2 = rel_dict[rel_keys_arr[desc[:, 1]]]
    ng = rel_dict[rel_keys_arr[asc[:, :DISK]]]
    nk1, nk2 = jax.random.split(noise_key)
    e1 = jax.random.normal(nk1, (B, HID), jnp.float32)
    e2 = jax.random.normal(nk2, (B, HID), jnp.float32)
    ref_vae, ref_csl, ref_z = reason_reference(p1, p2, ng, e1, e2, weights)

    assert jnp.allclose(loss_vae, ref_vae, rtol=2e-2, atol=2e-2), (loss_vae, ref_vae)
    assert jnp.allclose(loss_csl, ref_csl, rtol=2e-2, atol=2e-2), (loss_csl, ref_csl)
    assert jnp.allclose(z_rel, ref_z, rtol=2e-2, atol=2e-2)

    print("KERNEL_OK")
</pallas_src>

<mosaic_0001>
module attributes {stable_mosaic.version = 11 : i64} {
  func.func @reason_kernel(%arg0: memref<5x2x128xf32, #tpu.memory_space<vmem>>, %arg1: memref<32x128xf32, #tpu.memory_space<vmem>>, %arg2: memref<12x128x128xf32, #tpu.memory_space<vmem>>, %arg3: memref<12x1x128xf32, #tpu.memory_space<vmem>>, %arg4: memref<1x128xf32, #tpu.memory_space<vmem>>, %arg5: memref<2x128xf32, #tpu.memory_space<vmem>>) attributes {dimension_semantics = [], scalar_prefetch = 0 : i64, scratch_operands = 0 : i64, tpu.core_type = #tpu.core_type<tc>} {
    %c0 = arith.constant 0 : index
    %c0_0 = arith.constant 0 : index
    %c0_1 = arith.constant 0 : index
    %0 = vector.load %arg0[%c0, %c0_0, %c0_1] : memref<5x2x128xf32, #tpu.memory_space<vmem>>, vector<1x2x128xf32>
    %1 = vector.shape_cast %0 : vector<1x2x128xf32> to vector<2x128xf32>
    %c1 = arith.constant 1 : index
    %c0_2 = arith.constant 0 : index
    %c0_3 = arith.constant 0 : index
    %2 = vector.load %arg0[%c1, %c0_2, %c0_3] : memref<5x2x128xf32, #tpu.memory_space<vmem>>, vector<1x2x128xf32>
    %3 = vector.shape_cast %2 : vector<1x2x128xf32> to vector<2x128xf32>
    %c2 = arith.constant 2 : index
    %c0_4 = arith.constant 0 : index
    %c0_5 = arith.constant 0 : index
    %4 = vector.load %arg0[%c2, %c0_4, %c0_5] : memref<5x2x128xf32, #tpu.memory_space<vmem>>, vector<1x2x128xf32>
    %5 = vector.shape_cast %4 : vector<1x2x128xf32> to vector<2x128xf32>
    %c3 = arith.constant 3 : index
    %c0_6 = arith.constant 0 : index
    %c0_7 = arith.constant 0 : index
    %6 = vector.load %arg0[%c3, %c0_6, %c0_7] : memref<5x2x128xf32, #tpu.memory_space<vmem>>, vector<1x2x128xf32>
    %7 = vector.shape_cast %6 : vector<1x2x128xf32> to vector<2x128xf32>
    %c4 = arith.constant 4 : index
    %c0_8 = arith.constant 0 : index
    %c0_9 = arith.constant 0 : index
    %8 = vector.load %arg0[%c4, %c0_8, %c0_9] : memref<5x2x128xf32, #tpu.memory_space<vmem>>, vector<1x2x128xf32>
    %9 = vector.shape_cast %8 : vector<1x2x128xf32> to vector<2x128xf32>
    %c0_10 = arith.constant 0 : index
    %c0_11 = arith.constant 0 : index
    %10 = vector.load %arg1[%c0_10, %c0_11] : memref<32x128xf32, #tpu.memory_space<vmem>>, vector<32x128xf32>
    %c0_12 = arith.constant 0 : index
    %c0_13 = arith.constant 0 : index
    %c0_14 = arith.constant 0 : index
    %11 = vector.load %arg2[%c0_12, %c0_13, %c0_14] : memref<12x128x128xf32, #tpu.memory_space<vmem>>, vector<1x128x128xf32>
    %12 = vector.shape_cast %11 : vector<1x128x128xf32> to vector<128x128xf32>
    %cst = arith.constant dense<0.000000e+00> : vector<2x128xf32>
    %13 = tpu.matmul %1, %12, %cst {dimension_numbers = #tpu.dot_dimension_numbers<[1], [0], [0], [1], [0, 0, 1, 1], [], []>} : vector<2x128xf32>, vector<128x128xf32>, vector<2x128xf32> -> vector<2x128xf32>
    %c0_15 = arith.constant 0 : index
    %c0_16 = arith.constant 0 : index
    %c0_17 = arith.constant 0 : index
    %14 = vector.load %arg3[%c0_15, %c0_16, %c0_17] : memref<12x1x128xf32, #tpu.memory_space<vmem>>, vector<1x1x128xf32>
    %15 = vector.shape_cast %14 : vector<1x1x128xf32> to vector<1x128xf32>
    %16 = vector.broadcast %15 : vector<1x128xf32> to vector<2x128xf32>
    %17 = arith.addf %13, %16 : vector<2x128xf32>
    %cst_18 = arith.constant 0.000000e+00 : f32
    %18 = vector.broadcast %cst_18 : f32 to vector<2x128xf32>
    %19 = arith.cmpf oge, %17, %18 : vector<2x128xf32>
    %cst_19 = arith.constant 2.000000e-01 : f32
    %20 = vector.broadcast %cst_19 : f32 to vector<2x128xf32>
    %21 = arith.mulf %20, %17 : vector<2x128xf32>
    %22 = arith.select %19, %17, %21 : vector<2x128xi1>, vector<2x128xf32>
    %c1_20 = arith.constant 1 : index
    %c0_21 = arith.constant 0 : index
    %c0_22 = arith.constant 0 : index
    %23 = vector.load %arg2[%c1_20, %c0_21, %c0_22] : memref<12x128x128xf32, #tpu.memory_space<vmem>>, vector<1x128x128xf32>
    %24 = vector.shape_cast %23 : vector<1x128x128xf32> to vector<128x128xf32>
    %cst_23 = arith.constant dense<0.000000e+00> : vector<2x128xf32>
    %25 = tpu.matmul %22, %24, %cst_23 {dimension_numbers = #tpu.dot_dimension_numbers<[1], [0], [0], [1], [0, 0, 1, 1], [], []>} : vector<2x128xf32>, vector<128x128xf32>, vector<2x128xf32> -> vector<2x128xf32>
    %c1_24 = arith.constant 1 : index
    %c0_25 = arith.constant 0 : index
    %c0_26 = arith.constant 0 : index
    %26 = vector.load %arg3[%c1_24, %c0_25, %c0_26] : memref<12x1x128xf32, #tpu.memory_space<vmem>>, vector<1x1x128xf32>
    %27 = vector.shape_cast %26 : vector<1x1x128xf32> to vector<1x128xf32>
    %28 = vector.broadcast %27 : vector<1x128xf32> to vector<2x128xf32>
    %29 = arith.addf %25, %28 : vector<2x128xf32>
    %c2_27 = arith.constant 2 : index
    %c0_28 = arith.constant 0 : index
    %c0_29 = arith.constant 0 : index
    %30 = vector.load %arg2[%c2_27, %c0_28, %c0_29] : memref<12x128x128xf32, #tpu.memory_space<vmem>>, vector<1x128x128xf32>
    %31 = vector.shape_cast %30 : vector<1x128x128xf32> to vector<128x128xf32>
    %cst_30 = arith.constant dense<0.000000e+00> : vector<2x128xf32>
    %32 = tpu.matmul %22, %31, %cst_30 {dimension_numbers = #tpu.dot_dimension_numbers<[1], [0], [0], [1], [0, 0, 1, 1], [], []>} : vector<2x128xf32>, vector<128x128xf32>, vector<2x128xf32> -> vector<2x128xf32>
    %c2_31 = arith.constant 2 : index
    %c0_32 = arith.constant 0 : index
    %c0_33 = arith.constant 0 : index
    %33 = vector.load %arg3[%c2_31, %c0_32, %c0_33] : memref<12x1x128xf32, #tpu.memory_space<vmem>>, vector<1x1x128xf32>
    %34 = vector.shape_cast %33 : vector<1x1x128xf32> to vector<1x128xf32>
    %35 = vector.broadcast %34 : vector<1x128xf32> to vector<2x128xf32>
    %36 = arith.addf %32, %35 : vector<2x128xf32>
    %37 = math.exp %36 : vector<2x128xf32>
    %38 = arith.mulf %7, %37 : vector<2x128xf32>
    %39 = arith.addf %29, %38 : vector<2x128xf32>
    %c3_34 = arith.constant 3 : index
    %c0_35 = arith.constant 0 : index
    %c0_36 = arith.constant 0 : index
    %40 = vector.load %arg2[%c3_34, %c0_35, %c0_36] : memref<12x128x128xf32, #tpu.memory_space<vmem>>, vector<1x128x128xf32>
    %41 = vector.shape_cast %40 : vector<1x128x128xf32> to vector<128x128xf32>
    %cst_37 = arith.constant dense<0.000000e+00> : vector<2x128xf32>
    %42 = tpu.matmul %39, %41, %cst_37 {dimension_numbers = #tpu.dot_dimension_numbers<[1], [0], [0], [1], [0, 0, 1, 1], [], []>} : vector<2x128xf32>, vector<128x128xf32>, vector<2x128xf32> -> vector<2x128xf32>
    %c4_38 = arith.constant 4 : index
    %c0_39 = arith.constant 0 : index
    %c0_40 = arith.constant 0 : index
    %43 = vector.load %arg2[%c4_38, %c0_39, %c0_40] : memref<12x128x128xf32, #tpu.memory_space<vmem>>, vector<1x128x128xf32>
    %44 = vector.shape_cast %43 : vector<1x128x128xf32> to vector<128x128xf32>
    %cst_41 = arith.constant dense<0.000000e+00> : vector<2x128xf32>
    %45 = tpu.matmul %5, %44, %cst_41 {dimension_numbers = #tpu.dot_dimension_numbers<[1], [0], [0], [1], [0, 0, 1, 1], [], []>} : vector<2x128xf32>, vector<128x128xf32>, vector<2x128xf32> -> vector<2x128xf32>
    %46 = arith.addf %42, %45 : vector<2x128xf32>
    %c3_42 = arith.constant 3 : index
    %c0_43 = arith.constant 0 : index
    %c0_44 = arith.constant 0 : index
    %47 = vector.load %arg3[%c3_42, %c0_43, %c0_44] : memref<12x1x128xf32, #tpu.memory_space<vmem>>, vector<1x1x128xf32>
    %48 = vector.shape_cast %47 : vector<1x1x128xf32> to vector<1x128xf32>
    %49 = vector.broadcast %48 : vector<1x128xf32> to vector<2x128xf32>
    %50 = arith.addf %46, %49 : vector<2x128xf32>
    %cst_45 = arith.constant 0.000000e+00 : f32
    %51 = vector.broadcast %cst_45 : f32 to vector<2x128xf32>
    %52 = arith.cmpf oge, %50, %51 : vector<2x128xf32>
    %cst_46 = arith.constant 2.000000e-01 : f32
    %53 = vector.broadcast %cst_46 : f32 to vector<2x128xf32>
    %54 = arith.mulf %53, %50 : vector<2x128xf32>
    %55 = arith.select %52, %50, %54 : vector<2x128xi1>, vector<2x128xf32>
    %c5 = arith.constant 5 : index
    %c0_47 = arith.constant 0 : index
    %c0_48 = arith.constant 0 : index
    %56 = vector.load %arg2[%c5, %c0_47, %c0_48] : memref<12x128x128xf32, #tpu.memory_space<vmem>>, vector<1x128x128xf32>
    %57 = vector.shape_cast %56 : vector<1x128x128xf32> to vector<128x128xf32>
    %cst_49 = arith.constant dense<0.000000e+00> : vector<2x128xf32>
    %58 = tpu.matmul %55, %57, %cst_49 {dimension_numbers = #tpu.dot_dimension_numbers<[1], [0], [0], [1], [0, 0, 1, 1], [], []>} : vector<2x128xf32>, vector<128x128xf32>, vector<2x128xf32> -> vector<2x128xf32>
    %c5_50 = arith.constant 5 : index
    %c0_51 = arith.constant 0 : index
    %c0_52 = arith.constant 0 : index
    %59 = vector.load %arg3[%c5_50, %c0_51, %c0_52] : memref<12x1x128xf32, #tpu.memory_space<vmem>>, vector<1x1x128xf32>
    %60 = vector.shape_cast %59 : vector<1x1x128xf32> to vector<1x128xf32>
    %61 = vector.broadcast %60 : vector<1x128xf32> to vector<2x128xf32>
    %62 = arith.addf %58, %61 : vector<2x128xf32>
    %63 = math.tanh %62 : vector<2x128xf32>
    %64 = arith.subf %63, %3 : vector<2x128xf32>
    %65 = arith.mulf %64, %64 : vector<2x128xf32>
    %66 = vector.shape_cast %65 : vector<2x128xf32> to vector<1x2x128xf32>
    %cst_53 = arith.constant dense<0.000000e+00> : vector<1xf32>
    %67 = vector.multi_reduction <add>, %66, %cst_53 [1, 2] : vector<1x2x128xf32> to vector<1xf32>
    %68 = vector.shape_cast %67 : vector<1xf32> to vector<1x1x1xf32>
    %69 = vector.extract %68[0, 0, 0] : f32 from vector<1x1x1xf32>
    %70 = vector.broadcast %69 : f32 to vector<1x1xf32>
    %cst_54 = arith.constant 2.000000e+00 : f32
    %71 = vector.broadcast %cst_54 : f32 to vector<2x128xf32>
    %72 = arith.mulf %71, %36 : vector<2x128xf32>
    %cst_55 = arith.constant 1.000000e+00 : f32
    %73 = vector.broadcast %cst_55 : f32 to vector<2x128xf32>
    %74 = arith.addf %73, %72 : vector<2x128xf32>
    %75 = arith.mulf %29, %29 : vector<2x128xf32>
    %76 = arith.subf %74, %75 : vector<2x128xf32>
    %77 = arith.mulf %37, %37 : vector<2x128xf32>
    %78 = arith.subf %76, %77 : vector<2x128xf32>
    %cst_56 = arith.constant -5.000000e-01 : f32
    %79 = vector.broadcast %cst_56 : f32 to vector<2x128xf32>
    %80 = arith.mulf %79, %78 : vector<2x128xf32>
    %81 = vector.shape_cast %80 : vector<2x128xf32> to vector<1x2x128xf32>
    %cst_57 = arith.constant dense<0.000000e+00> : vector<1xf32>
    %82 = vector.multi_reduction <add>, %81, %cst_57 [1, 2] : vector<1x2x128xf32> to vector<1xf32>
    %83 = vector.shape_cast %82 : vector<1xf32> to vector<1x1x1xf32>
    %84 = vector.extract %83[0, 0, 0] : f32 from vector<1x1x1xf32>
    %85 = vector.broadcast %84 : f32 to vector<1x1xf32>
    %86 = arith.addf %70, %85 : vector<1x1xf32>
    %87 = arith.mulf %9, %37 : vector<2x128xf32>
    %88 = arith.addf %29, %87 : vector<2x128xf32>
    %c6 = arith.constant 6 : index
    %c0_58 = arith.constant 0 : index
    %c0_59 = arith.constant 0 : index
    %89 = vector.load %arg2[%c6, %c0_58, %c0_59] : memref<12x128x128xf32, #tpu.memory_space<vmem>>, vector<1x128x128xf32>
    %90 = vector.shape_cast %89 : vector<1x128x128xf32> to vector<128x128xf32>
    %cst_60 = arith.constant dense<0.000000e+00> : vector<2x128xf32>
    %91 = tpu.matmul %88, %90, %cst_60 {dimension_numbers = #tpu.dot_dimension_numbers<[1], [0], [0], [1], [0, 0, 1, 1], [], []>} : vector<2x128xf32>, vector<128x128xf32>, vector<2x128xf32> -> vector<2x128xf32>
    %c6_61 = arith.constant 6 : index
    %c0_62 = arith.constant 0 : index
    %c0_63 = arith.constant 0 : index
    %92 = vector.load %arg3[%c6_61, %c0_62, %c0_63] : memref<12x1x128xf32, #tpu.memory_space<vmem>>, vector<1x1x128xf32>
    %93 = vector.shape_cast %92 : vector<1x1x128xf32> to vector<1x128xf32>
    %94 = vector.broadcast %93 : vector<1x128xf32> to vector<2x128xf32>
    %95 = arith.addf %91, %94 : vector<2x128xf32>
    %cst_64 = arith.constant 0.000000e+00 : f32
    %96 = vector.broadcast %cst_64 : f32 to vector<2x128xf32>
    %97 = arith.maximumf %95, %96 : vector<2x128xf32>
    %c7 = arith.constant 7 : index
    %c0_65 = arith.constant 0 : index
    %c0_66 = arith.constant 0 : index
    %98 = vector.load %arg2[%c7, %c0_65, %c0_66] : memref<12x128x128xf32, #tpu.memory_space<vmem>>, vector<1x128x128xf32>
    %99 = vector.shape_cast %98 : vector<1x128x128xf32> to vector<128x128xf32>
    %cst_67 = arith.constant dense<0.000000e+00> : vector<2x128xf32>
    %100 = tpu.matmul %97, %99, %cst_67 {dimension_numbers = #tpu.dot_dimension_numbers<[1], [0], [0], [1], [0, 0, 1, 1], [], []>} : vector<2x128xf32>, vector<128x128xf32>, vector<2x128xf32> -> vector<2x128xf32>
    %c7_68 = arith.constant 7 : index
    %c0_69 = arith.constant 0 : index
    %c0_70 = arith.constant 0 : index
    %101 = vector.load %arg3[%c7_68, %c0_69, %c0_70] : memref<12x1x128xf32, #tpu.memory_space<vmem>>, vector<1x1x128xf32>
    %102 = vector.shape_cast %101 : vector<1x1x128xf32> to vector<1x128xf32>
    %103 = vector.broadcast %102 : vector<1x128xf32> to vector<2x128xf32>
    %104 = arith.addf %100, %103 : vector<2x128xf32>
    %cst_71 = arith.constant 0.000000e+00 : f32
    %105 = vector.broadcast %cst_71 : f32 to vector<2x128xf32>
    %106 = arith.maximumf %104, %105 : vector<2x128xf32>
    %c8 = arith.constant 8 : index
    %c0_72 = arith.constant 0 : index
    %c0_73 = arith.constant 0 : index
    %107 = vector.load %arg2[%c8, %c0_72, %c0_73] : memref<12x128x128xf32, #tpu.memory_space<vmem>>, vector<1x128x128xf32>
    %108 = vector.shape_cast %107 : vector<1x128x128xf32> to vector<128x128xf32>
    %cst_74 = arith.constant dense<0.000000e+00> : vector<2x128xf32>
    %109 = tpu.matmul %3, %108, %cst_74 {dimension_numbers = #tpu.dot_dimension_numbers<[1], [0], [0], [1], [0, 0, 1, 1], [], []>} : vector<2x128xf32>, vector<128x128xf32>, vector<2x128xf32> -> vector<2x128xf32>
    %c8_75 = arith.constant 8 : index
    %c0_76 = arith.constant 0 : index
    %c0_77 = arith.constant 0 : index
    %110 = vector.load %arg3[%c8_75, %c0_76, %c0_77] : memref<12x1x128xf32, #tpu.memory_space<vmem>>, vector<1x1x128xf32>
    %111 = vector.shape_cast %110 : vector<1x1x128xf32> to vector<1x128xf32>
    %112 = vector.broadcast %111 : vector<1x128xf32> to vector<2x128xf32>
    %113 = arith.addf %109, %112 : vector<2x128xf32>
    %cst_78 = arith.constant 0.000000e+00 : f32
    %114 = vector.broadcast %cst_78 : f32 to vector<2x128xf32>
    %115 = arith.maximumf %113, %114 : vector<2x128xf32>
    %c9 = arith.constant 9 : index
    %c0_79 = arith.constant 0 : index
    %c0_80 = arith.constant 0 : index
    %116 = vector.load %arg2[%c9, %c0_79, %c0_80] : memref<12x128x128xf32, #tpu.memory_space<vmem>>, vector<1x128x128xf32>
    %117 = vector.shape_cast %116 : vector<1x128x128xf32> to vector<128x128xf32>
    %cst_81 = arith.constant dense<0.000000e+00> : vector<2x128xf32>
    %118 = tpu.matmul %115, %117, %cst_81 {dimension_numbers = #tpu.dot_dimension_numbers<[1], [0], [0], [1], [0, 0, 1, 1], [], []>} : vector<2x128xf32>, vector<128x128xf32>, vector<2x128xf32> -> vector<2x128xf32>
    %c9_82 = arith.constant 9 : index
    %c0_83 = arith.constant 0 : index
    %c0_84 = arith.constant 0 : index
    %119 = vector.load %arg3[%c9_82, %c0_83, %c0_84] : memref<12x1x128xf32, #tpu.memory_space<vmem>>, vector<1x1x128xf32>
    %120 = vector.shape_cast %119 : vector<1x1x128xf32> to vector<1x128xf32>
    %121 = vector.broadcast %120 : vector<1x128xf32> to vector<2x128xf32>
    %122 = arith.addf %118, %121 : vector<2x128xf32>
    %cst_85 = arith.constant 0.000000e+00 : f32
    %123 = vector.broadcast %cst_85 : f32 to vector<2x128xf32>
    %124 = arith.maximumf %122, %123 : vector<2x128xf32>
    %c10 = arith.constant 10 : index
    %c0_86 = arith.constant 0 : index
    %c0_87 = arith.constant 0 : index
    %125 = vector.load %arg2[%c10, %c0_86, %c0_87] : memref<12x128x128xf32, #tpu.memory_space<vmem>>, vector<1x128x128xf32>
    %126 = vector.shape_cast %125 : vector<1x128x128xf32> to vector<128x128xf32>
    %cst_88 = arith.constant dense<0.000000e+00> : vector<32x128xf32>
    %127 = tpu.matmul %10, %126, %cst_88 {dimension_numbers = #tpu.dot_dimension_numbers<[1], [0], [0], [1], [0, 0, 1, 1], [], []>} : vector<32x128xf32>, vector<128x128xf32>, vector<32x128xf32> -> vector<32x128xf32>
    %c10_89 = arith.constant 10 : index
    %c0_90 = arith.constant 0 : index
    %c0_91 = arith.constant 0 : index
    %128 = vector.load %arg3[%c10_89, %c0_90, %c0_91] : memref<12x1x128xf32, #tpu.memory_space<vmem>>, vector<1x1x128xf32>
    %129 = vector.shape_cast %128 : vector<1x1x128xf32> to vector<1x128xf32>
    %130 = vector.broadcast %129 : vector<1x128xf32> to vector<32x128xf32>
    %131 = arith.addf %127, %130 : vector<32x128xf32>
    %cst_92 = arith.constant 0.000000e+00 : f32
    %132 = vector.broadcast %cst_92 : f32 to vector<32x128xf32>
    %133 = arith.maximumf %131, %132 : vector<32x128xf32>
    %c11 = arith.constant 11 : index
    %c0_93 = arith.constant 0 : index
    %c0_94 = arith.constant 0 : index
    %134 = vector.load %arg2[%c11, %c0_93, %c0_94] : memref<12x128x128xf32, #tpu.memory_space<vmem>>, vector<1x128x128xf32>
    %135 = vector.shape_cast %134 : vector<1x128x128xf32> to vector<128x128xf32>
    %cst_95 = arith.constant dense<0.000000e+00> : vector<32x128xf32>
    %136 = tpu.matmul %133, %135, %cst_95 {dimension_numbers = #tpu.dot_dimension_numbers<[1], [0], [0], [1], [0, 0, 1, 1], [], []>} : vector<32x128xf32>, vector<128x128xf32>, vector<32x128xf32> -> vector<32x128xf32>
    %c11_96 = arith.constant 11 : index
    %c0_97 = arith.constant 0 : index
    %c0_98 = arith.constant 0 : index
    %137 = vector.load %arg3[%c11_96, %c0_97, %c0_98] : memref<12x1x128xf32, #tpu.memory_space<vmem>>, vector<1x1x128xf32>
    %138 = vector.shape_cast %137 : vector<1x1x128xf32> to vector<1x128xf32>
    %139 = vector.broadcast %138 : vector<1x128xf32> to vector<32x128xf32>
    %140 = arith.addf %136, %139 : vector<32x128xf32>
    %cst_99 = arith.constant 0.000000e+00 : f32
    %141 = vector.broadcast %cst_99 : f32 to vector<32x128xf32>
    %142 = arith.maximumf %140, %141 : vector<32x128xf32>
    %143 = arith.mulf %106, %124 : vector<2x128xf32>
    %cst_100 = arith.constant dense<0.000000e+00> : vector<2xf32>
    %144 = vector.multi_reduction <add>, %143, %cst_100 [1] : vector<2x128xf32> to vector<2xf32>
    %145 = vector.shape_cast %144 : vector<2xf32> to vector<2x1xf32>
    %cst_101 = arith.constant 14.2857141 : f32
    %146 = vector.broadcast %cst_101 : f32 to vector<2x1xf32>
    %147 = arith.mulf %145, %146 : vector<2x1xf32>
    %cst_102 = arith.constant dense<0.000000e+00> : vector<2x32xf32>
    %148 = tpu.matmul %106, %142, %cst_102 {dimension_numbers = #tpu.dot_dimension_numbers<[1], [1], [0], [0], [0, 0, 1, 0], [], []>} : vector<2x128xf32>, vector<32x128xf32>, vector<2x32xf32> -> vector<2x32xf32>
    %cst_103 = arith.constant 14.2857141 : f32
    %149 = vector.broadcast %cst_103 : f32 to vector<2x32xf32>
    %150 = arith.mulf %148, %149 : vector<2x32xf32>
    %151 = tpu.iota {dimensions = array<i32: 1>} : vector<2x32xi32>
    %152 = tpu.iota {dimensions = array<i32: 0>} : vector<2x32xi32>
    %c16_i32 = arith.constant 16 : i32
    %153 = vector.broadcast %c16_i32 : i32 to vector<2x32xi32>
    %154 = arith.muli %152, %153 : vector<2x32xi32>
    %155 = arith.cmpi sge, %151, %154 : vector<2x32xi32>
    %c16_i32_104 = arith.constant 16 : i32
    %156 = vector.broadcast %c16_i32_104 : i32 to vector<2x32xi32>
    %157 = arith.muli %152, %156 : vector<2x32xi32>
    %c15_i32 = arith.constant 15 : i32
    %158 = vector.broadcast %c15_i32 : i32 to vector<2x32xi32>
    %159 = arith.addi %157, %158 : vector<2x32xi32>
    %160 = arith.cmpi slt, %151, %159 : vector<2x32xi32>
    %161 = arith.andi %155, %160 : vector<2x32xi1>
    %cst_105 = arith.constant -1.000000e+30 : f32
    %162 = vector.broadcast %cst_105 : f32 to vector<2x32xf32>
    %163 = arith.select %161, %150, %162 : vector<2x32xi1>, vector<2x32xf32>
    %cst_106 = arith.constant dense<0xFF800000> : vector<2xf32>
    %164 = vector.multi_reduction <maximumf>, %163, %cst_106 [1] : vector<2x32xf32> to vector<2xf32>
    %165 = vector.shape_cast %164 : vector<2xf32> to vector<2x1xf32>
    %166 = arith.maximumf %147, %165 : vector<2x1xf32>
    %167 = arith.subf %147, %166 : vector<2x1xf32>
    %168 = math.exp %167 : vector<2x1xf32>
    %169 = vector.broadcast %166 : vector<2x1xf32> to vector<2x32xf32>
    %170 = arith.subf %163, %169 : vector<2x32xf32>
    %171 = math.exp %170 : vector<2x32xf32>
    %cst_107 = arith.constant dense<0.000000e+00> : vector<2xf32>
    %172 = vector.multi_reduction <add>, %171, %cst_107 [1] : vector<2x32xf32> to vector<2xf32>
    %173 = vector.shape_cast %172 : vector<2xf32> to vector<2x1xf32>
    %174 = arith.addf %168, %173 : vector<2x1xf32>
    %175 = math.log %174 : vector<2x1xf32>
    %176 = arith.addf %166, %175 : vector<2x1xf32>
    %177 = arith.subf %176, %147 : vector<2x1xf32>
    %178 = vector.shape_cast %177 : vector<2x1xf32> to vector<1x2x1xf32>
    %cst_108 = arith.constant dense<0.000000e+00> : vector<1xf32>
    %179 = vector.multi_reduction <add>, %178, %cst_108 [1, 2] : vector<1x2x1xf32> to vector<1xf32>
    %180 = vector.shape_cast %179 : vector<1xf32> to vector<1x1x1xf32>
    %181 = vector.extract %180[0, 0, 0] : f32 from vector<1x1x1xf32>
    %182 = vector.broadcast %181 : f32 to vector<1x1xf32>
    %183 = tpu.iota {dimensions = array<i32: 1>} : vector<1x128xi32>
    %c0_i32 = arith.constant 0 : i32
    %184 = vector.broadcast %c0_i32 : i32 to vector<1x128xi32>
    %185 = arith.cmpi eq, %183, %184 : vector<1x128xi32>
    %cst_109 = arith.constant 0.000000e+00 : f32
    %186 = vector.shape_cast %86 : vector<1x1xf32> to vector<1x1xf32>
    %187 = vector.broadcast %186 : vector<1x1xf32> to vector<1x128xf32>
    %188 = vector.broadcast %cst_109 : f32 to vector<1x128xf32>
    %189 = arith.select %185, %187, %188 : vector<1x128xi1>, vector<1x128xf32>
    %c1_i32 = arith.constant 1 : i32
    %190 = vector.broadcast %c1_i32 : i32 to vector<1x128xi32>
    %191 = arith.cmpi eq, %183, %190 : vector<1x128xi32>
    %cst_110 = arith.constant 0.000000e+00 : f32
    %192 = vector.shape_cast %182 : vector<1x1xf32> to vector<1x1xf32>
    %193 = vector.broadcast %192 : vector<1x1xf32> to vector<1x128xf32>
    %194 = vector.broadcast %cst_110 : f32 to vector<1x128xf32>
    %195 = arith.select %191, %193, %194 : vector<1x128xi1>, vector<1x128xf32>
    %196 = arith.addf %189, %195 : vector<1x128xf32>
    %c0_111 = arith.constant 0 : index
    %c0_112 = arith.constant 0 : index
    %197 = vector.load %arg4[%c0_111, %c0_112] : memref<1x128xf32, #tpu.memory_space<vmem>>, vector<1x128xf32>
    tpu.vector_store %arg4[%c0_111, %c0_112], %196 {strides = array<i32>} : memref<1x128xf32, #tpu.memory_space<vmem>>, vector<1x128xf32>,
    %c0_113 = arith.constant 0 : index
    %c0_114 = arith.constant 0 : index
    %198 = vector.load %arg5[%c0_113, %c0_114] : memref<2x128xf32, #tpu.memory_space<vmem>>, vector<2x128xf32>
    tpu.vector_store %arg5[%c0_113, %c0_114], %106 {strides = array<i32>} : memref<2x128xf32, #tpu.memory_space<vmem>>, vector<2x128xf32>,
    return
  }
}

</mosaic_0001>

<bundles_post_ra>
// kernel: neg.1
= control target key start
LH: loop header
LB: loop body
LE: loop exit
PB: predicated region body
PF: predicated region fallthrough
CT: control target
= control target key end

     0   :  { %s24_s0 = inlined_call_operand.vmem [shape: f32[2,16], index: 0, kind: input, shape index: {}]   ;;  %s25_s1 = inlined_call_operand.vmem [shape: f32[2,16], index: 1, kind: output, shape index: {}]  }
   0x1   :  { %v2_v0 = vld [vmem:[%s24_s0] sm:$0x3] }
   0x2   :  { %v5_v1 = vxor.u32 2147483648, %v2_v0 }
   0x4   :  { %7 = vst [vmem:[%s25_s1] sm:$0x3] %v5_v1 }

// kernel: reason_forward.1
= control target key start
LH: loop header
LB: loop body
LE: loop exit
PB: predicated region body
PF: predicated region fallthrough
CT: control target
= control target key end

     0   :  { %v2565_v0 = vmov 0.0|0.0   ;;  %vm2566_vm0 = vmmov 0   ;;  %v2567_v4 = vmov 0.0   ;;  %vm606_vm3 = vcmask 1041408   ;;  %s3362_s2 = inlined_call_operand.vmem [shape: f32[12,128,128], index: 2, kind: input, shape index: {}]   ;;  %s3363_s0 = inlined_call_operand.vmem [shape: f32[5,2,128], index: 0, kind: input, shape index: {}]   ;;  %s3364_s3 = inlined_call_operand.vmem [shape: f32[12,1,128], index: 3, kind: input, shape index: {}]   ;;  %s3365_s1 = inlined_call_operand.vmem [shape: f32[32,128], index: 1, kind: input, shape index: {}]   ;;  %s3366_s5 = inlined_call_operand.vmem [shape: f32[2,128], index: 5, kind: output, shape index: {1}]   ;;  %s3367_s4 = inlined_call_operand.vmem [shape: f32[1,128], index: 4, kind: output, shape index: {0}]  }
   0x1   :  { %2236 = vmatprep.subr.bf16.mxu0 %v2565_v0  ;;  %v32_v1 = vld [vmem:[%s3362_s2] sm:$0xff]  ;;  %v33_v2 = vld [vmem:[%s3362_s2 + $0x8] sm:$0xff]  ;;  %v34_v3 = vld [vmem:[%s3362_s2 + $0x10] sm:$0xff]  ;;  %1831 = vmatprep.mubr.msk.f32.mxu0 %vm2566_vm0, %v2567_v4  ;;  %vm1337_vm7 = vcmask 254976   ;;  %vm1356_vm8 = vcmask 1024  }
   0x2   :  { %v2237_v5 = vpack.c.bf16 %v33_v2, %v32_v1  ;;  %v35_v6 = vld [vmem:[%s3362_s2 + $0x18] sm:$0xff]  ;;  %2260 = vmatprep.subr.bf16.mxu1 %v2565_v0  ;;  %1866 = vmatprep.mubr.msk.f32.mxu1 %vm2566_vm0, %v2567_v4  ;;  %v36_v8 = vld [vmem:[%s3362_s2 + $0x20] sm:$0xff]  ;;  %v37_v9 = vld [vmem:[%s3362_s2 + $0x28] sm:$0xff] }
   0x3   :  { %v2240_v7 = vpack.c.bf16 %v35_v6, %v34_v3  ;;  %v1388_v10 = vld [vmem:[%s3362_s2 + $0x80] sm:$0xff]  ;;  %v1389_v11 = vld [vmem:[%s3362_s2 + $0x88] sm:$0xff]  ;;  %v2243_v12 = vpack.c.bf16 %v37_v9, %v36_v8  ;;  %v1390_v14 = vld [vmem:[%s3362_s2 + $0x90] sm:$0xff] }
   0x4   :  { %2238 = vmatpush3.bf16.msra.mxu0 %v2237_v5  ;;  %v2261_v13 = vpack.c.bf16 %v1389_v11, %v1388_v10  ;;  %v1391_v15 = vld [vmem:[%s3362_s2 + $0x98] sm:$0xff]  ;;  %v38_v16 = vld [vmem:[%s3362_s2 + $0x30] sm:$0xff]  ;;  %v1392_v19 = vld [vmem:[%s3362_s2 + $0xa0] sm:$0xff] }
   0x5   :  { %2239 = vmatprep.subr.bf16.mxu0 %v2565_v0  ;;  %v39_v17 = vld [vmem:[%s3362_s2 + $0x38] sm:$0xff]  ;;  %v2264_v18 = vpack.c.bf16 %v1391_v15, %v1390_v14  ;;  %v1393_v20 = vld [vmem:[%s3362_s2 + $0xa8] sm:$0xff]  ;;  %v40_v22 = vld [vmem:[%s3362_s2 + $0x40] sm:$0xff] }
   0x6   :  { %2262 = vmatpush3.bf16.msra.mxu1 %v2261_v13  ;;  %v2246_v21 = vpack.c.bf16 %v39_v17, %v38_v16  ;;  %v41_v23 = vld [vmem:[%s3362_s2 + $0x48] sm:$0xff]  ;;  %v2267_v24 = vpack.c.bf16 %v1393_v20, %v1392_v19  ;;  %v1394_v25 = vld [vmem:[%s3362_s2 + $0xb0] sm:$0xff]  ;;  %v1395_v26 = vld [vmem:[%s3362_s2 + $0xb8] sm:$0xff] }
   0x7   :  { %2263 = vmatprep.subr.bf16.mxu1 %v2565_v0  ;;  %v2249_v27 = vpack.c.bf16 %v41_v23, %v40_v22  ;;  %v42_v28 = vld [vmem:[%s3362_s2 + $0x50] sm:$0xff]  ;;  %v43_v29 = vld [vmem:[%s3362_s2 + $0x58] sm:$0xff]  ;;  %v2270_v30 = vpack.c.bf16 %v1395_v26, %v1394_v25  ;;  %v1396_v31 = vld [vmem:[%s3362_s2 + $0xc0] sm:$0xff] }
   0x8   :  { %2241 = vmatpush3.bf16.msra.mxu0 %v2240_v7  ;;  %v1397_v32 = vld [vmem:[%s3362_s2 + $0xc8] sm:$0xff]  ;;  %v2252_v33 = vpack.c.bf16 %v43_v29, %v42_v28  ;;  %v44_v34 = vld [vmem:[%s3362_s2 + $0x60] sm:$0xff]  ;;  %v1398_v37 = vld [vmem:[%s3362_s2 + $0xd0] sm:$0xff] }
   0x9   :  { %2242 = vmatprep.subr.bf16.mxu0 %v2565_v0  ;;  %v45_v35 = vld [vmem:[%s3362_s2 + $0x68] sm:$0xff]  ;;  %v2273_v36 = vpack.c.bf16 %v1397_v32, %v1396_v31  ;;  %v1399_v38 = vld [vmem:[%s3362_s2 + $0xd8] sm:$0xff]  ;;  %v46_v40 = vld [vmem:[%s3362_s2 + $0x70] sm:$0xff] }
   0xa   :  { %2265 = vmatpush3.bf16.msra.mxu1 %v2264_v18  ;;  %v2255_v39 = vpack.c.bf16 %v45_v35, %v44_v34  ;;  %v47_v41 = vld [vmem:[%s3362_s2 + $0x78] sm:$0xff]  ;;  %v2276_v42 = vpack.c.bf16 %v1399_v38, %v1398_v37  ;;  %v1400_v43 = vld [vmem:[%s3362_s2 + $0xe0] sm:$0xff]  ;;  %v1401_v44 = vld [vmem:[%s3362_s2 + $0xe8] sm:$0xff] }
   0xb   :  { %2266 = vmatprep.subr.bf16.mxu1 %v2565_v0  ;;  %v2258_v45 = vpack.c.bf16 %v47_v41, %v46_v40  ;;  %v1406_v46 = vld [vmem:[%s3362_s2 + $0x100] sm:$0xff]  ;;  %v1407_v47 = vld [vmem:[%s3362_s2 + $0x108] sm:$0xff]  ;;  %v2279_v48 = vpack.c.bf16 %v1401_v44, %v1400_v43  ;;  %v1408_v51 = vld [vmem:[%s3362_s2 + $0x110] sm:$0xff] }
   0xc   :  { %2244 = vmatpush3.bf16.msra.mxu0 %v2243_v12  ;;  %v19_v49 = vld [vmem:[%s3363_s0] sm:$0x3]  ;;  %v2285_v50 = vpack.c.bf16 %v1407_v47, %v1406_v46  ;;  %v1409_v52 = vld [vmem:[%s3362_s2 + $0x118] sm:$0xff]  ;;  %v1411_v55 = vld [vmem:[%s3362_s2 + $0x128] sm:$0xff] }
   0xd   :  { %2245 = vmatprep.subr.bf16.mxu0 %v2565_v0  ;;  %v2288_v53 = vpack.c.bf16 %v1409_v52, %v1408_v51  ;;  %v1410_v54 = vld [vmem:[%s3362_s2 + $0x120] sm:$0xff]  ;;  %v1412_v57 = vld [vmem:[%s3362_s2 + $0x130] sm:$0xff]  ;;  %v1413_v58 = vld [vmem:[%s3362_s2 + $0x138] sm:$0xff] }
   0xe   :  { %2268 = vmatpush3.bf16.msra.mxu1 %v2267_v24  ;;  %v2291_v56 = vpack.c.bf16 %v1411_v55, %v1410_v54  ;;  %v2294_v59 = vpack.c.bf16 %v1413_v58, %v1412_v57  ;;  %v1414_v60 = vld [vmem:[%s3362_s2 + $0x140] sm:$0xff]  ;;  %v1415_v61 = vld [vmem:[%s3362_s2 + $0x148] sm:$0xff]  ;;  %v1416_v63 = vld [vmem:[%s3362_s2 + $0x150] sm:$0xff] }
   0xf   :  { %2269 = vmatprep.subr.bf16.mxu1 %v2565_v0  ;;  %v2297_v62 = vpack.c.bf16 %v1415_v61, %v1414_v60  ;;  %v1417_v1 = vld [vmem:[%s3362_s2 + $0x158] sm:$0xff]  ;;  %v1418_v3 = vld [vmem:[%s3362_s2 + $0x160] sm:$0xff]  ;;  %v1419_v5 = vld [vmem:[%s3362_s2 + $0x168] sm:$0xff] }
  0x10   :  { %2247 = vmatpush3.bf16.msra.mxu0 %v2246_v21  ;;  %v2300_v2 = vpack.c.bf16 %v1417_v1, %v1416_v63  ;;  %v2303_v6 = vpack.c.bf16 %v1419_v5, %v1418_v3  ;;  %v1402_v7 = vld [vmem:[%s3362_s2 + $0xf0] sm:$0xff]  ;;  %v1403_v8 = vld [vmem:[%s3362_s2 + $0xf8] sm:$0xff]  ;;  %v1387_v13 = vld [vmem:[%s3364_s3] ss:$0 sm:$0xff] }
  0x11   :  { %2248 = vmatprep.subr.bf16.mxu0 %v2565_v0  ;;  %v1420_v9 = vld [vmem:[%s3362_s2 + $0x170] sm:$0xff]  ;;  %v2282_v10 = vpack.c.bf16 %v1403_v8, %v1402_v7  ;;  %v1421_v11 = vld [vmem:[%s3362_s2 + $0x178] sm:$0xff]  ;;  %v1440_v14 = vld [vmem:[%s3362_s2 + $0x200] sm:$0xff] }
  0x12   :  { %2271 = vmatpush3.bf16.msra.mxu1 %v2270_v30  ;;  %v2306_v12 = vpack.c.bf16 %v1421_v11, %v1420_v9  ;;  %v1441_v16 = vld [vmem:[%s3362_s2 + $0x208] sm:$0xff]  ;;  %v1424_v17 = vld [vmem:[%s3362_s2 + $0x180] sm:$0xff]  ;;  %v1442_v24 = vld [vmem:[%s3362_s2 + $0x210] sm:$0xff] }
  0x13   :  { %2272 = vmatprep.subr.bf16.mxu1 %v2565_v0  ;;  %v1425_v18 = vld [vmem:[%s3362_s2 + $0x188] sm:$0xff]  ;;  %v2309_v22 = vpack.c.bf16 %v1441_v16, %v1440_v14  ;;  %v1443_v25 = vld [vmem:[%s3362_s2 + $0x218] sm:$0xff]  ;;  %v1426_v26 = vld [vmem:[%s3362_s2 + $0x190] sm:$0xff] }
  0x14   :  { %2250 = vmatpush3.bf16.msra.mxu0 %v2249_v27  ;;  %v2333_v23 = vpack.c.bf16 %v1425_v18, %v1424_v17  ;;  %v1427_v27 = vld [vmem:[%s3362_s2 + $0x198] sm:$0xff]  ;;  %v2312_v29 = vpack.c.bf16 %v1443_v25, %v1442_v24  ;;  %v1444_v31 = vld [vmem:[%s3362_s2 + $0x220] sm:$0xff]  ;;  %v1445_v32 = vld [vmem:[%s3362_s2 + $0x228] sm:$0xff] }
  0x15   :  { %2251 = vmatprep.subr.bf16.mxu0 %v2565_v0  ;;  %v2336_v30 = vpack.c.bf16 %v1427_v27, %v1426_v26  ;;  %v1429_v34 = vld [vmem:[%s3362_s2 + $0x1a8] sm:$0xff]  ;;  %v2315_v35 = vpack.c.bf16 %v1445_v32, %v1444_v31  ;;  %v1446_v37 = vld [vmem:[%s3362_s2 + $0x230] sm:$0xff]  ;;  %v1447_v38 = vld [vmem:[%s3362_s2 + $0x238] sm:$0xff] }
  0x16   :  { %2274 = vmatpush3.bf16.msra.mxu1 %v2273_v36  ;;  %v2318_v40 = vpack.c.bf16 %v1447_v38, %v1446_v37  ;;  %v1431_v41 = vld [vmem:[%s3362_s2 + $0x1b8] sm:$0xff]  ;;  %v1448_v43 = vld [vmem:[%s3362_s2 + $0x240] sm:$0xff]  ;;  %v1449_v44 = vld [vmem:[%s3362_s2 + $0x248] sm:$0xff] }
  0x17   :  { %2275 = vmatprep.subr.bf16.mxu1 %v2565_v0  ;;  %v2321_v46 = vpack.c.bf16 %v1449_v44, %v1448_v43  ;;  %v1433_v47 = vld [vmem:[%s3362_s2 + $0x1c8] sm:$0xff]  ;;  %v1434_v51 = vld [vmem:[%s3362_s2 + $0x1d0] sm:$0xff]  ;;  %v1452_v54 = vld [vmem:[%s3362_s2 + $0x260] sm:$0xff] }
  0x18   :  { %2253 = vmatpush3.bf16.msra.mxu0 %v2252_v33  ;;  %v1428_v33 = vld [vmem:[%s3362_s2 + $0x1a0] sm:$0xff]  ;;  %v1453_v55 = vld [vmem:[%s3362_s2 + $0x268] sm:$0xff]  ;;  %v1454_v61 = vld [vmem:[%s3362_s2 + $0x270] sm:$0xff] }
  0x19   :  { %2254 = vmatprep.subr.bf16.mxu0 %v2565_v0  ;;  %v2339_v36 = vpack.c.bf16 %v1429_v34, %v1428_v33  ;;  %v1436_v57 = vld [vmem:[%s3362_s2 + $0x1e0] sm:$0xff]  ;;  %v1437_v58 = vld [vmem:[%s3362_s2 + $0x1e8] sm:$0xff]  ;;  %v1438_v63 = vld [vmem:[%s3362_s2 + $0x1f0] sm:$0xff] }
  0x1a   :  { %2277 = vmatpush3.bf16.msra.mxu1 %v2276_v42  ;;  %v2351_v60 = vpack.c.bf16 %v1437_v58, %v1436_v57  ;;  %v1439_v1 = vld [vmem:[%s3362_s2 + $0x1f8] sm:$0xff]  ;;  %v1384_v5 = vld [vmem:[%s3363_s0 + $0x4] sm:$0x3]  ;;  %v1459_v7 = vld [vmem:[%s3362_s2 + $0x288] sm:$0xff] }
  0x1b   :  { %2278 = vmatprep.subr.bf16.mxu1 %v2565_v0  ;;  %v2354_v3 = vpack.c.bf16 %v1439_v1, %v1438_v63  ;;  %v1460_v8 = vld [vmem:[%s3362_s2 + $0x290] sm:$0xff]  ;;  %v1405_v14 = vld [vmem:[%s3364_s3 + $0x1] ss:$0 sm:$0xff]  ;;  %v1385_v37 = vld [vmem:[%s3363_s0 + $0x6] sm:$0x3] }
  0x1c   :  { %2256 = vmatpush3.bf16.msra.mxu0 %v2255_v39  ;;  %v1430_v39 = vld [vmem:[%s3362_s2 + $0x1b0] sm:$0xff]  ;;  %v1386_v38 = vld [vmem:[%s3363_s0 + $0x8] sm:$0x3]  ;;  %v1484_v58 = vld [vmem:[%s3362_s2 + $0x340] sm:$0xff] }
  0x1d   :  { %2257 = vmatprep.subr.bf16.mxu0 %v2565_v0  ;;  %v2342_v42 = vpack.c.bf16 %v1431_v41, %v1430_v39  ;;  %v1468_v34 = vld [vmem:[%s3362_s2 + $0x2d0] sm:$0xff]  ;;  %v1476_v39 = vld [vmem:[%s3362_s2 + $0x300] sm:$0xff] }
  0x1e   :  { %2280 = vmatpush3.bf16.msra.mxu1 %v2279_v48  ;;  %v1488_v1 = vld [vmem:[%s3362_s2 + $0x360] sm:$0xff] }
  0x1f   :  { %2281 = vmatprep.subr.bf16.mxu1 %v2565_v0 }
  0x20   :  { %2259 = vmatpush3.bf16.msra.mxu0 %v2258_v45  ;;  %v1432_v45 = vld [vmem:[%s3362_s2 + $0x1c0] sm:$0xff] }
  0x21   :  { %2284 = vmatprep.subr.bf16.mxu0 %v2565_v0  ;;  %v2345_v48 = vpack.c.bf16 %v1433_v47, %v1432_v45  ;;  %v1478_v47 = vld [vmem:[%s3362_s2 + $0x310] sm:$0xff] }
  0x22   :  { %2283 = vmatpush3.bf16.msra.mxu1 %v2282_v10  ;;  %v1461_v10 = vld [vmem:[%s3362_s2 + $0x298] sm:$0xff] }
  0x23   :  { %1832 = vmatmul.mubr.f32.vlgmr.msra.gmra.mrb[0].mxu0 %v19_v49  ;;  %2308 = vmatprep.subr.bf16.mxu1 %v2565_v0  ;;  %v1450_v49 = vld [vmem:[%s3362_s2 + $0x250] sm:$0xff]  ;;  %v2360_v11 = vpack.c.bf16 %v1461_v10, %v1460_v8  ;;  %v1512_v8 = vld [vmem:[%s3362_s2 + $0x400] sm:$0xff] }
  0x24   :  { %2286 = vmatpush3.bf16.msra.mxu0 %v2285_v50  ;;  %1901 = vmatprep.mubr.msk.f32.mxu0 %vm2566_vm0, %v2567_v4  ;;  %v1451_v50 = vld [vmem:[%s3362_s2 + $0x258] sm:$0xff] }
  0x25   :  { %2287 = vmatprep.subr.bf16.mxu0 %v2565_v0  ;;  %v2324_v52 = vpack.c.bf16 %v1451_v50, %v1450_v49 }
  0x28   :  { %2289 = vmatpush3.bf16.msra.mxu0 %v2288_v53  ;;  %v1435_v53 = vld [vmem:[%s3362_s2 + $0x1d8] sm:$0xff] }
  0x29   :  { %2290 = vmatprep.subr.bf16.mxu0 %v2565_v0 }
  0x2c   :  { %2292 = vmatpush3.bf16.msra.mxu0 %v2291_v56  ;;  %v2348_v56 = vpack.c.bf16 %v1435_v53, %v1434_v51  ;;  %v1481_v53 = vld [vmem:[%s3362_s2 + $0x328] sm:$0xff] }
  0x2d   :  { %2293 = vmatprep.subr.bf16.mxu0 %v2565_v0 }
  0x30   :  { %2295 = vmatpush3.bf16.msra.mxu0 %v2294_v59  ;;  %v2327_v59 = vpack.c.bf16 %v1453_v55, %v1452_v54  ;;  %v1482_v55 = vld [vmem:[%s3362_s2 + $0x330] sm:$0xff] }
  0x31   :  { %2296 = vmatprep.subr.bf16.mxu0 %v2565_v0 }
  0x34   :  { %2298 = vmatpush3.bf16.msra.mxu0 %v2297_v62  ;;  %v1455_v62 = vld [vmem:[%s3362_s2 + $0x278] sm:$0xff] }
  0x35   :  { %2299 = vmatprep.subr.bf16.mxu0 %v2565_v0 }
  0x38   :  { %2301 = vmatpush3.bf16.msra.mxu0 %v2300_v2  ;;  %v2330_v2 = vpack.c.bf16 %v1455_v62, %v1454_v61  ;;  %v1486_v61 = vld [vmem:[%s3362_s2 + $0x350] sm:$0xff]  ;;  %v1487_v62 = vld [vmem:[%s3362_s2 + $0x358] sm:$0xff] }
  0x39   :  { %2302 = vmatprep.subr.bf16.mxu0 %v2565_v0  ;;  %v2396_v63 = vpack.c.bf16 %v1487_v62, %v1486_v61  ;;  %v1563_v61 = vld [vmem:[%s3362_s2 + $0x578] sm:$0xff] }
  0x3c   :  { %2304 = vmatpush3.bf16.msra.mxu0 %v2303_v6  ;;  %v1458_v6 = vld [vmem:[%s3362_s2 + $0x280] sm:$0xff] }
  0x3d   :  { %2305 = vmatprep.subr.bf16.mxu0 %v2565_v0  ;;  %v2357_v9 = vpack.c.bf16 %v1459_v7, %v1458_v6  ;;  %v1491_v6 = vld [vmem:[%s3362_s2 + $0x378] sm:$0xff] }
  0x40   :  { %2307 = vmatpush3.bf16.msra.mxu0 %v2306_v12  ;;  %v1462_v12 = vld [vmem:[%s3362_s2 + $0x2a0] sm:$0xff] }
  0x41   :  { %2332 = vmatprep.subr.bf16.mxu0 %v2565_v0 }
  0xf6   :  { %v121_v15 = vpop.f32.mrb[0].mxu0 }
  0xf7   :  { %v122_v19 = vadd.f32 %v1387_v13, %v121_v15  ;;  %v1833_v20 = vpop.f32.mrb[1].mxu0  ;;  %v1463_v13 = vld [vmem:[%s3362_s2 + $0x2a8] sm:$0xff]  ;;  %v1423_v15 = vld [vmem:[%s3364_s3 + $0x2] ss:$0 sm:$0xff] }
  0xf8   :  { %v2363_v16 = vpack.c.bf16 %v1463_v13, %v1462_v12  ;;  %v1465_v20 = vld [vmem:[%s3362_s2 + $0x2b8] sm:$0xff] }
  0xf9   :  { %v126_v21 = vmul.f32 0.2, %v122_v19  ;;  %vm125_vm1 = vcmp.ge.f32.partialorder %v122_v19, 0.0  ;;  %v1515_v12 = vld [vmem:[%s3362_s2 + $0x418] sm:$0xff] }
  0xfb   :  { %v127_v28 = vsel %vm125_vm1, %v122_v19, %v126_v21  ;;  %v1464_v19 = vld [vmem:[%s3362_s2 + $0x2b0] sm:$0xff] }
  0xfc   :  { %1867 = vmatmul.mubr.f32.vlgmr.msra.gmra.mrb[0].mxu1 %v127_v28  ;;  %1902 = vmatmul.mubr.f32.vlgmr.msra.gmra.mrb[2].mxu0 %v127_v28  ;;  %v2366_v27 = vpack.c.bf16 %v1465_v20, %v1464_v19  ;;  %v1466_v28 = vld [vmem:[%s3362_s2 + $0x2c0] sm:$0xff] }
  0xfd   :  { %2310 = vmatpush3.bf16.msra.mxu1 %v2309_v22  ;;  %2334 = vmatpush3.bf16.msra.mxu0 %v2333_v23  ;;  %v1520_v20 = vld [vmem:[%s3362_s2 + $0x440] sm:$0xff] }
  0xfe   :  { %2311 = vmatprep.subr.bf16.mxu1 %v2565_v0  ;;  %2335 = vmatprep.subr.bf16.mxu0 %v2565_v0 }
  0xff   :  { %1936 = vmatprep.mubr.msk.f32.mxu1 %vm2566_vm0, %v2567_v4  ;;  %1971 = vmatprep.mubr.msk.f32.mxu0 %vm2566_vm0, %v2567_v4 }
 0x101   :  { %2313 = vmatpush3.bf16.msra.mxu1 %v2312_v29  ;;  %2337 = vmatpush3.bf16.msra.mxu0 %v2336_v30  ;;  %v1467_v29 = vld [vmem:[%s3362_s2 + $0x2c8] sm:$0xff] }
 0x102   :  { %2314 = vmatprep.subr.bf16.mxu1 %v2565_v0  ;;  %2338 = vmatprep.subr.bf16.mxu0 %v2565_v0  ;;  %v2369_v32 = vpack.c.bf16 %v1467_v29, %v1466_v28  ;;  %v1526_v29 = vld [vmem:[%s3362_s2 + $0x470] sm:$0xff] }
 0x105   :  { %2316 = vmatpush3.bf16.msra.mxu1 %v2315_v35  ;;  %2340 = vmatpush3.bf16.msra.mxu0 %v2339_v36  ;;  %v1469_v35 = vld [vmem:[%s3362_s2 + $0x2d8] sm:$0xff] }
 0x106   :  { %2317 = vmatprep.subr.bf16.mxu1 %v2565_v0  ;;  %2341 = vmatprep.subr.bf16.mxu0 %v2565_v0  ;;  %v2372_v36 = vpack.c.bf16 %v1469_v35, %v1468_v34  ;;  %v1550_v35 = vld [vmem:[%s3362_s2 + $0x510] sm:$0xff] }
 0x109   :  { %2319 = vmatpush3.bf16.msra.mxu1 %v2318_v40  ;;  %2343 = vmatpush3.bf16.msra.mxu0 %v2342_v42  ;;  %v1477_v40 = vld [vmem:[%s3362_s2 + $0x308] sm:$0xff] }
 0x10a   :  { %2320 = vmatprep.subr.bf16.mxu1 %v2565_v0  ;;  %2344 = vmatprep.subr.bf16.mxu0 %v2565_v0  ;;  %v2381_v45 = vpack.c.bf16 %v1477_v40, %v1476_v39  ;;  %v28_v39 = vld [vmem:[%s3365_s1] sm:$0xff] }
 0x10b   :  { %v1552_v40 = vld [vmem:[%s3362_s2 + $0x520] sm:$0xff] }
 0x10d   :  { %2322 = vmatpush3.bf16.msra.mxu1 %v2321_v46  ;;  %2346 = vmatpush3.bf16.msra.mxu0 %v2345_v48  ;;  %v1479_v48 = vld [vmem:[%s3362_s2 + $0x318] sm:$0xff] }
 0x10e   :  { %2323 = vmatprep.subr.bf16.mxu1 %v2565_v0  ;;  %2347 = vmatprep.subr.bf16.mxu0 %v2565_v0  ;;  %v2384_v51 = vpack.c.bf16 %v1479_v48, %v1478_v47  ;;  %v1557_v47 = vld [vmem:[%s3362_s2 + $0x548] sm:$0xff] }
 0x111   :  { %2325 = vmatpush3.bf16.msra.mxu1 %v2324_v52  ;;  %2349 = vmatpush3.bf16.msra.mxu0 %v2348_v56  ;;  %v1480_v52 = vld [vmem:[%s3362_s2 + $0x320] sm:$0xff]  ;;  %v1483_v56 = vld [vmem:[%s3362_s2 + $0x338] sm:$0xff] }
 0x112   :  { %2326 = vmatprep.subr.bf16.mxu1 %v2565_v0  ;;  %2350 = vmatprep.subr.bf16.mxu0 %v2565_v0  ;;  %v2387_v54 = vpack.c.bf16 %v1481_v53, %v1480_v52  ;;  %v2390_v57 = vpack.c.bf16 %v1483_v56, %v1482_v55  ;;  %v1560_v53 = vld [vmem:[%s3362_s2 + $0x560] sm:$0xff]  ;;  %v1471_v56 = vld [vmem:[%s3362_s2 + $0x2e8] sm:$0xff] }
 0x113   :  { %v1470_v55 = vld [vmem:[%s3362_s2 + $0x2e0] sm:$0xff] }
 0x115   :  { %2328 = vmatpush3.bf16.msra.mxu1 %v2327_v59  ;;  %2352 = vmatpush3.bf16.msra.mxu0 %v2351_v60  ;;  %v1485_v59 = vld [vmem:[%s3362_s2 + $0x348] sm:$0xff] }
 0x116   :  { %2329 = vmatprep.subr.bf16.mxu1 %v2565_v0  ;;  %2353 = vmatprep.subr.bf16.mxu0 %v2565_v0  ;;  %v2393_v60 = vpack.c.bf16 %v1485_v59, %v1484_v58  ;;  %v2375_v59 = vpack.c.bf16 %v1471_v56, %v1470_v55  ;;  %v1536_v55 = vld [vmem:[%s3362_s2 + $0x4b0] sm:$0xff] }
 0x119   :  { %2331 = vmatpush3.bf16.msra.mxu1 %v2330_v2  ;;  %2355 = vmatpush3.bf16.msra.mxu0 %v2354_v3  ;;  %v1489_v2 = vld [vmem:[%s3362_s2 + $0x368] sm:$0xff] }
 0x11a   :  { %2356 = vmatprep.subr.bf16.mxu1 %v2565_v0  ;;  %2380 = vmatprep.subr.bf16.mxu0 %v2565_v0  ;;  %v2399_v3 = vpack.c.bf16 %v1489_v2, %v1488_v1  ;;  %v1473_v1 = vld [vmem:[%s3362_s2 + $0x2f8] sm:$0xff] }
 0x11c   :  { %1937 = vmatmul.mubr.f32.vlgmr.msra.gmra.mrb[2].mxu1 %v1384_v5  ;;  %v1490_v5 = vld [vmem:[%s3362_s2 + $0x370] sm:$0xff] }
 0x11d   :  { %2006 = vmatprep.mubr.msk.f32.mxu1 %vm2566_vm0, %v2567_v4  ;;  %2358 = vmatpush3.bf16.msra.mxu1 %v2357_v9  ;;  %v2402_v7 = vpack.c.bf16 %v1491_v6, %v1490_v5  ;;  %v1513_v9 = vld [vmem:[%s3362_s2 + $0x408] sm:$0xff]  ;;  %v30_v6 = vld [vmem:[%s3365_s1 + $0x10] sm:$0xff] }
 0x11e   :  { %2359 = vmatprep.subr.bf16.mxu1 %v2565_v0  ;;  %v2429_v10 = vpack.c.bf16 %v1513_v9, %v1512_v8  ;;  %v29_v5 = vld [vmem:[%s3365_s1 + $0x8] sm:$0xff]  ;;  %v1457_v9 = vld [vmem:[%s3364_s3 + $0x3] ss:$0 sm:$0xff] }
 0x121   :  { %2361 = vmatpush3.bf16.msra.mxu1 %v2360_v11  ;;  %v1514_v11 = vld [vmem:[%s3362_s2 + $0x410] sm:$0xff] }
 0x122   :  { %2362 = vmatprep.subr.bf16.mxu1 %v2565_v0  ;;  %v2432_v13 = vpack.c.bf16 %v1515_v12, %v1514_v11  ;;  %v1494_v12 = vld [vmem:[%s3362_s2 + $0x380] sm:$0xff] }
 0x125   :  { %2364 = vmatpush3.bf16.msra.mxu1 %v2363_v16 }
 0x126   :  { %2365 = vmatprep.subr.bf16.mxu1 %v2565_v0 }
 0x129   :  { %2367 = vmatpush3.bf16.msra.mxu1 %v2366_v27  ;;  %v1525_v27 = vld [vmem:[%s3362_s2 + $0x468] sm:$0xff] }
 0x12a   :  { %2368 = vmatprep.subr.bf16.mxu1 %v2565_v0 }
 0x12d   :  { %2370 = vmatpush3.bf16.msra.mxu1 %v2369_v32  ;;  %v1549_v32 = vld [vmem:[%s3362_s2 + $0x508] sm:$0xff] }
 0x12e   :  { %2371 = vmatprep.subr.bf16.mxu1 %v2565_v0 }
 0x131   :  { %2373 = vmatpush3.bf16.msra.mxu1 %v2372_v36  ;;  %v1551_v36 = vld [vmem:[%s3362_s2 + $0x518] sm:$0xff] }
 0x132   :  { %2374 = vmatprep.subr.bf16.mxu1 %v2565_v0 }
 0x135   :  { %2376 = vmatpush3.bf16.msra.mxu1 %v2375_v59 }
 0x136   :  { %2377 = vmatprep.subr.bf16.mxu1 %v2565_v0 }
 0x1cf   :  { %v219_v17 = vpop.f32.mrb[0].mxu1  ;;  %v314_v18 = vpop.f32.mrb[2].mxu0 }
 0x1d0   :  { %v220_v21 = vadd.f32 %v1405_v14, %v219_v17  ;;  %v315_v22 = vadd.f32 %v1423_v15, %v314_v18  ;;  %v1868_v23 = vpop.f32.mrb[1].mxu1  ;;  %v1903_v24 = vpop.f32.mrb[3].mxu0  ;;  %v1516_v14 = vld [vmem:[%s3362_s2 + $0x420] sm:$0xff]  ;;  %v1517_v15 = vld [vmem:[%s3362_s2 + $0x428] sm:$0xff]  ;;  %v1518_v17 = vld [vmem:[%s3362_s2 + $0x430] sm:$0xff] }
 0x1d1   :  { %v2435_v16 = vpack.c.bf16 %v1517_v15, %v1516_v14  ;;  %v1519_v18 = vld [vmem:[%s3362_s2 + $0x438] sm:$0xff]  ;;  %v1522_v23 = vld [vmem:[%s3362_s2 + $0x450] sm:$0xff] }
 0x1d2   :  { %v318_v25 = vmul.f32 1.442695, %v315_v22  ;;  %v618_v26 = vmul.f32 2.0, %v315_v22  ;;  %v620_v30 = vmul.f32 %v220_v21, %v220_v21  ;;  %v2438_v19 = vpack.c.bf16 %v1519_v18, %v1518_v17  ;;  %v1523_v24 = vld [vmem:[%s3362_s2 + $0x458] sm:$0xff]  ;;  %v1496_v17 = vld [vmem:[%s3362_s2 + $0x390] sm:$0xff] }
 0x1d3   :  { %v1497_v18 = vld [vmem:[%s3362_s2 + $0x398] sm:$0xff] }
 0x1d4   :  { %2555 = vpow2.f32 %v318_v25  ;;  %v619_v31 = vadd.f32 1.0, %v618_v26  ;;  %v2444_v25 = vpack.c.bf16 %v1523_v24, %v1522_v23  ;;  %v1524_v26 = vld [vmem:[%s3362_s2 + $0x460] sm:$0xff]  ;;  %v1500_v24 = vld [vmem:[%s3362_s2 + $0x3b0] sm:$0xff] }
 0x1d5   :  { %v2447_v28 = vpack.c.bf16 %v1525_v27, %v1524_v26  ;;  %v1502_v27 = vld [vmem:[%s3362_s2 + $0x3c0] sm:$0xff] }
 0x1d6   :  { %v621_v33 = vsub.f32 %v619_v31, %v620_v30  ;;  %v1527_v30 = vld [vmem:[%s3362_s2 + $0x478] sm:$0xff]  ;;  %v1548_v31 = vld [vmem:[%s3362_s2 + $0x500] sm:$0xff] }
 0x1d7   :  { %v2476_v34 = vpack.c.bf16 %v1549_v32, %v1548_v31  ;;  %v1505_v31 = vld [vmem:[%s3362_s2 + $0x3d8] sm:$0xff] }
 0x1de   :  { %v2556_v41 = vpop.eup %2555 }
 0x1df   :  { %v320_v42 = vmul.f32 %v2556_v41, %v1385_v37  ;;  %v637_v43 = vmul.f32 %v2556_v41, %v1386_v38  ;;  %v622_v44 = vmul.f32 %v2556_v41, %v2556_v41  ;;  %v3087_v37 = vld [vmem:[%s3363_s0 + $0x2] sm:$0x3]  ;;  %v2480_v38 = vpack.c.bf16 %v1551_v36, %v1550_v35  ;;  %v1553_v41 = vld [vmem:[%s3362_s2 + $0x528] sm:$0xff]  ;;  %v1508_v36 = vld [vmem:[%s3362_s2 + $0x3f0] sm:$0xff] }
 0x1e1   :  { %v321_v46 = vadd.f32 %v320_v42, %v220_v21  ;;  %v638_v49 = vadd.f32 %v637_v43, %v220_v21  ;;  %v2967_v50 = vsub.f32 %v621_v33, %v622_v44  ;;  %v1521_v21 = vld [vmem:[%s3362_s2 + $0x448] sm:$0xff]  ;;  %v2450_v33 = vpack.c.bf16 %v1527_v30, %v1526_v29  ;;  %v1554_v43 = vld [vmem:[%s3362_s2 + $0x530] sm:$0xff]  ;;  %v1555_v44 = vld [vmem:[%s3362_s2 + $0x538] sm:$0xff] }
 0x1e2   :  { %v2441_v22 = vpack.c.bf16 %v1521_v21, %v1520_v20  ;;  %v2484_v42 = vpack.c.bf16 %v1553_v41, %v1552_v40  ;;  %v2408_v20 = vpack.c.bf16 %v1497_v18, %v1496_v17  ;;  %v1498_v21 = vld [vmem:[%s3362_s2 + $0x3a0] sm:$0xff]  ;;  %v1504_v30 = vld [vmem:[%s3362_s2 + $0x3d0] sm:$0xff] }
 0x1e3   :  { %1972 = vmatmul.mubr.f32.vlgmr.msra.gmra.mrb[4].mxu0 %v321_v46  ;;  %v1556_v46 = vld [vmem:[%s3362_s2 + $0x540] sm:$0xff]  ;;  %v2420_v32 = vpack.c.bf16 %v1505_v31, %v1504_v30  ;;  %v1579_v31 = vld [vmem:[%s3362_s2 + $0x5e8] sm:$0xff] }
 0x1e4   :  { %2382 = vmatpush3.bf16.msra.mxu0 %v2381_v45  ;;  %2041 = vmatprep.mubr.msk.f32.mxu0 %vm2566_vm0, %v2567_v4  ;;  %v2488_v45 = vpack.c.bf16 %v1555_v44, %v1554_v43  ;;  %v2492_v48 = vpack.c.bf16 %v1557_v47, %v1556_v46  ;;  %v1530_v44 = vld [vmem:[%s3362_s2 + $0x480] sm:$0xff] }
 0x1e5   :  { %2383 = vmatprep.subr.bf16.mxu0 %v2565_v0  ;;  %v1570_v18 = vld [vmem:[%s3362_s2 + $0x5a0] sm:$0xff] }
 0x1e6   :  { %v1578_v30 = vld [vmem:[%s3362_s2 + $0x5e0] sm:$0xff] }
 0x1e8   :  { %2385 = vmatpush3.bf16.msra.mxu0 %v2384_v51  ;;  %v1559_v51 = vld [vmem:[%s3362_s2 + $0x558] sm:$0xff] }
 0x1e9   :  { %2386 = vmatprep.subr.bf16.mxu0 %v2565_v0 }
 0x1ec   :  { %2388 = vmatpush3.bf16.msra.mxu0 %v2387_v54  ;;  %v1561_v54 = vld [vmem:[%s3362_s2 + $0x568] sm:$0xff] }
 0x1ed   :  { %2389 = vmatprep.subr.bf16.mxu0 %v2565_v0 }
 0x1ef   :  { %v422_v58 = vpop.f32.mrb[2].mxu1 }
 0x1f0   :  { %2391 = vmatpush3.bf16.msra.mxu0 %v2390_v57  ;;  %v2500_v57 = vpack.c.bf16 %v1561_v54, %v1560_v53  ;;  %v1938_v62 = vpop.f32.mrb[3].mxu1  ;;  %v1535_v53 = vld [vmem:[%s3362_s2 + $0x4a8] sm:$0xff] }
 0x1f1   :  { %2392 = vmatprep.subr.bf16.mxu0 %v2565_v0 }
 0x1f4   :  { %2394 = vmatpush3.bf16.msra.mxu0 %v2393_v60  ;;  %v1562_v60 = vld [vmem:[%s3362_s2 + $0x570] sm:$0xff] }
 0x1f5   :  { %2395 = vmatprep.subr.bf16.mxu0 %v2565_v0  ;;  %v2504_v2 = vpack.c.bf16 %v1563_v61, %v1562_v60  ;;  %v1540_v60 = vld [vmem:[%s3362_s2 + $0x4d0] sm:$0xff]  ;;  %v1541_v61 = vld [vmem:[%s3362_s2 + $0x4d8] sm:$0xff] }
 0x1f6   :  { %v2468_v62 = vpack.c.bf16 %v1541_v61, %v1540_v60 }
 0x1f8   :  { %2397 = vmatpush3.bf16.msra.mxu0 %v2396_v63  ;;  %v1472_v63 = vld [vmem:[%s3362_s2 + $0x2f0] sm:$0xff] }
 0x1f9   :  { %2398 = vmatprep.subr.bf16.mxu0 %v2565_v0 }
 0x1fc   :  { %2400 = vmatpush3.bf16.msra.mxu0 %v2399_v3  ;;  %v2378_v3 = vpack.c.bf16 %v1473_v1, %v1472_v63  ;;  %v1542_v63 = vld [vmem:[%s3362_s2 + $0x4e0] sm:$0xff]  ;;  %v1543_v1 = vld [vmem:[%s3362_s2 + $0x4e8] sm:$0xff] }
 0x1fd   :  { %2401 = vmatprep.subr.bf16.mxu0 %v2565_v0 }
 0x1fe   :  { %2379 = vmatpush3.bf16.msra.mxu1 %v2378_v3  ;;  %v1529_v3 = vld [vmem:[%s3364_s3 + $0x8] ss:$0 sm:$0xff] }
 0x1ff   :  { %2404 = vmatprep.subr.bf16.mxu1 %v2565_v0 }
 0x200   :  { %2403 = vmatpush3.bf16.msra.mxu0 %v2402_v7  ;;  %v31_v7 = vld [vmem:[%s3365_s1 + $0x18] sm:$0xff] }
 0x201   :  { %2428 = vmatprep.subr.bf16.mxu0 %v2565_v0 }
 0x203   :  { %2042 = vmatmul.mubr.f32.vlgmr.msra.gmra.mrb[6].mxu0 %v638_v49  ;;  %v1558_v49 = vld [vmem:[%s3362_s2 + $0x550] sm:$0xff] }
 0x204   :  { %2430 = vmatpush3.bf16.msra.mxu0 %v2429_v10  ;;  %2111 = vmatprep.mubr.msk.f32.mxu0 %vm2566_vm0, %v2567_v4  ;;  %v2496_v52 = vpack.c.bf16 %v1559_v51, %v1558_v49  ;;  %v1533_v49 = vld [vmem:[%s3362_s2 + $0x498] sm:$0xff] }
 0x205   :  { %2431 = vmatprep.subr.bf16.mxu0 %v2565_v0 }
 0x208   :  { %2433 = vmatpush3.bf16.msra.mxu0 %v2432_v13  ;;  %v1495_v13 = vld [vmem:[%s3362_s2 + $0x388] sm:$0xff] }
 0x209   :  { %2434 = vmatprep.subr.bf16.mxu0 %v2565_v0 }
 0x20c   :  { %2436 = vmatpush3.bf16.msra.mxu0 %v2435_v16  ;;  %v2405_v16 = vpack.c.bf16 %v1495_v13, %v1494_v12 }
 0x20d   :  { %2437 = vmatprep.subr.bf16.mxu0 %v2565_v0 }
 0x210   :  { %2439 = vmatpush3.bf16.msra.mxu0 %v2438_v19 }
 0x211   :  { %2440 = vmatprep.subr.bf16.mxu0 %v2565_v0 }
 0x214   :  { %2442 = vmatpush3.bf16.msra.mxu0 %v2441_v22  ;;  %v1499_v22 = vld [vmem:[%s3362_s2 + $0x3a8] sm:$0xff] }
 0x215   :  { %2443 = vmatprep.subr.bf16.mxu0 %v2565_v0  ;;  %v2411_v23 = vpack.c.bf16 %v1499_v22, %v1498_v21  ;;  %v1572_v21 = vld [vmem:[%s3362_s2 + $0x5b0] sm:$0xff]  ;;  %v1573_v22 = vld [vmem:[%s3362_s2 + $0x5b8] sm:$0xff] }
 0x218   :  { %2445 = vmatpush3.bf16.msra.mxu0 %v2444_v25  ;;  %v1501_v25 = vld [vmem:[%s3362_s2 + $0x3b8] sm:$0xff] }
 0x219   :  { %2446 = vmatprep.subr.bf16.mxu0 %v2565_v0  ;;  %v2414_v26 = vpack.c.bf16 %v1501_v25, %v1500_v24  ;;  %v1574_v24 = vld [vmem:[%s3362_s2 + $0x5c0] sm:$0xff]  ;;  %v1575_v25 = vld [vmem:[%s3362_s2 + $0x5c8] sm:$0xff] }
 0x21c   :  { %2448 = vmatpush3.bf16.msra.mxu0 %v2447_v28  ;;  %v1503_v28 = vld [vmem:[%s3362_s2 + $0x3c8] sm:$0xff] }
 0x21d   :  { %2449 = vmatprep.subr.bf16.mxu0 %v2565_v0  ;;  %v2417_v29 = vpack.c.bf16 %v1503_v28, %v1502_v27  ;;  %v1576_v27 = vld [vmem:[%s3362_s2 + $0x5d0] sm:$0xff]  ;;  %v1577_v28 = vld [vmem:[%s3362_s2 + $0x5d8] sm:$0xff] }
 0x220   :  { %2451 = vmatpush3.bf16.msra.mxu0 %v2450_v33  ;;  %v1506_v33 = vld [vmem:[%s3362_s2 + $0x3e0] sm:$0xff] }
 0x221   :  { %2477 = vmatprep.subr.bf16.mxu0 %v2476_v34 }
 0x223   :  { %2112 = vmatmul.mubr.f32.vlgmr.msra.gmra.mrb[8].mxu0 %v3087_v37 }
 0x224   :  { %2479 = vmatpush3.bf16.msra.mxu0 %v2476_v34  ;;  %2181 = vmatprep.mubr.f32.mxu0 %v28_v39  ;;  %v1507_v34 = vld [vmem:[%s3362_s2 + $0x3e8] sm:$0xff]  ;;  %v1493_v39 = vld [vmem:[%s3364_s3 + $0x6] ss:$0 sm:$0xff] }
 0x225   :  { %2481 = vmatprep.subr.bf16.mxu0 %v2480_v38  ;;  %v2423_v35 = vpack.c.bf16 %v1507_v34, %v1506_v33  ;;  %v1580_v33 = vld [vmem:[%s3362_s2 + $0x5f0] sm:$0xff]  ;;  %v1581_v34 = vld [vmem:[%s3362_s2 + $0x5f8] sm:$0xff] }
 0x228   :  { %2483 = vmatpush3.bf16.msra.mxu0 %v2480_v38  ;;  %v1509_v38 = vld [vmem:[%s3362_s2 + $0x3f8] sm:$0xff] }
 0x229   :  { %2485 = vmatprep.subr.bf16.mxu0 %v2484_v42 }
 0x22c   :  { %2487 = vmatpush3.bf16.msra.mxu0 %v2484_v42  ;;  %v2426_v42 = vpack.c.bf16 %v1509_v38, %v1508_v36  ;;  %v1565_v36 = vld [vmem:[%s3364_s3 + $0xa] ss:$0 sm:$0xff] }
 0x22d   :  { %2489 = vmatprep.subr.bf16.mxu0 %v2488_v45 }
 0x230   :  { %2491 = vmatpush3.bf16.msra.mxu0 %v2488_v45  ;;  %v1531_v45 = vld [vmem:[%s3362_s2 + $0x488] sm:$0xff] }
 0x231   :  { %2493 = vmatprep.subr.bf16.mxu0 %v2492_v48  ;;  %v2453_v46 = vpack.c.bf16 %v1531_v45, %v1530_v44 }
 0x234   :  { %2495 = vmatpush3.bf16.msra.mxu0 %v2492_v48  ;;  %v1532_v48 = vld [vmem:[%s3362_s2 + $0x490] sm:$0xff] }
 0x235   :  { %2497 = vmatprep.subr.bf16.mxu0 %v2496_v52  ;;  %v2456_v51 = vpack.c.bf16 %v1533_v49, %v1532_v48 }
 0x238   :  { %2499 = vmatpush3.bf16.msra.mxu0 %v2496_v52  ;;  %v1534_v52 = vld [vmem:[%s3362_s2 + $0x4a0] sm:$0xff] }
 0x239   :  { %2501 = vmatprep.subr.bf16.mxu0 %v2500_v57  ;;  %v2459_v54 = vpack.c.bf16 %v1535_v53, %v1534_v52  ;;  %v1511_v53 = vld [vmem:[%s3364_s3 + $0x7] ss:$0 sm:$0xff] }
 0x23c   :  { %2503 = vmatpush3.bf16.msra.mxu0 %v2500_v57  ;;  %v1538_v57 = vld [vmem:[%s3362_s2 + $0x4c0] sm:$0xff] }
 0x23d   :  { %2505 = vmatprep.subr.bf16.mxu0 %v2504_v2 }
 0x240   :  { %2507 = vmatpush3.bf16.msra.mxu0 %v2504_v2  ;;  %v2471_v2 = vpack.c.bf16 %v1543_v1, %v1542_v63  ;;  %v1583_v1 = vld [vmem:[%s3364_s3 + $0xb] ss:$0 sm:$0xff] }
 0x241   :  { %2540 = vmatprep.subr.bf16.mxu0 %v2565_v0 }
 0x243   :  { %2182 = vmatmul.mubr.f32.vlgmr.msra.gmra.mrb[10].mxu0 %v29_v5  ;;  %v1544_v5 = vld [vmem:[%s3362_s2 + $0x4f0] sm:$0xff] }
 0x244   :  { %2184 = vmatprep.mubr.f32.mxu0 %v30_v6  ;;  %v1545_v6 = vld [vmem:[%s3362_s2 + $0x4f8] sm:$0xff] }
 0x245   :  { %v2474_v12 = vpack.c.bf16 %v1545_v6, %v1544_v5 }
 0x247   :  { %2185 = vmatmul.mubr.f32.gmra.mrb[12].mxu0 %v31_v7  ;;  %v1566_v7 = vld [vmem:[%s3362_s2 + $0x580] sm:$0xff] }
 0x248   :  { %2233 = vmatprep.mubr.msk.f32.mxu0 %vm2566_vm0, %v2567_v4 }
 0x2b6   :  { %v492_v8 = vpop.f32.mrb[4].mxu0 }
 0x2b7   :  { %v493_v10 = vadd.f32 %v492_v8, %v422_v58  ;;  %v1973_v11 = vpop.f32.mrb[5].mxu0  ;;  %v1539_v58 = vld [vmem:[%s3362_s2 + $0x4c8] sm:$0xff] }
 0x2b8   :  { %v2465_v59 = vpack.c.bf16 %v1539_v58, %v1538_v57  ;;  %v1567_v8 = vld [vmem:[%s3362_s2 + $0x588] sm:$0xff] }
 0x2b9   :  { %v504_v14 = vadd.f32 %v1457_v9, %v493_v10  ;;  %v2508_v13 = vpack.c.bf16 %v1567_v8, %v1566_v7  ;;  %v1547_v57 = vld [vmem:[%s3364_s3 + $0x9] ss:$0 sm:$0xff] }
 0x2bb   :  { %v506_v15 = vmul.f32 0.2, %v504_v14  ;;  %vm505_vm2 = vcmp.ge.f32.partialorder %v504_v14, 0.0 }
 0x2bd   :  { %v507_v19 = vsel %vm505_vm2, %v504_v14, %v506_v15  ;;  %v1568_v14 = vld [vmem:[%s3362_s2 + $0x590] sm:$0xff]  ;;  %v1569_v15 = vld [vmem:[%s3362_s2 + $0x598] sm:$0xff] }
 0x2be   :  { %2007 = vmatmul.mubr.f32.vlgmr.msra.gmra.mrb[4].mxu1 %v507_v19  ;;  %v2512_v17 = vpack.c.bf16 %v1569_v15, %v1568_v14  ;;  %v1571_v19 = vld [vmem:[%s3362_s2 + $0x5a8] sm:$0xff] }
 0x2bf   :  { %2406 = vmatpush3.bf16.msra.mxu1 %v2405_v16  ;;  %2076 = vmatprep.mubr.msk.f32.mxu1 %vm2566_vm0, %v2567_v4 }
 0x2c0   :  { %2407 = vmatprep.subr.bf16.mxu1 %v2565_v0 }
 0x2c3   :  { %2409 = vmatpush3.bf16.msra.mxu1 %v2408_v20  ;;  %v2516_v20 = vpack.c.bf16 %v1571_v19, %v1570_v18 }
 0x2c4   :  { %2410 = vmatprep.subr.bf16.mxu1 %v2565_v0 }
 0x2c7   :  { %2412 = vmatpush3.bf16.msra.mxu1 %v2411_v23  ;;  %v2520_v23 = vpack.c.bf16 %v1573_v22, %v1572_v21 }
 0x2c8   :  { %2413 = vmatprep.subr.bf16.mxu1 %v2565_v0 }
 0x2cb   :  { %2415 = vmatpush3.bf16.msra.mxu1 %v2414_v26  ;;  %v2524_v26 = vpack.c.bf16 %v1575_v25, %v1574_v24 }
 0x2cc   :  { %2416 = vmatprep.subr.bf16.mxu1 %v2565_v0 }
 0x2cf   :  { %2418 = vmatpush3.bf16.msra.mxu1 %v2417_v29  ;;  %v2528_v29 = vpack.c.bf16 %v1577_v28, %v1576_v27  ;;  %v1475_v28 = vld [vmem:[%s3364_s3 + $0x5] ss:$0 sm:$0xff] }
 0x2d0   :  { %2419 = vmatprep.subr.bf16.mxu1 %v2565_v0 }
 0x2d3   :  { %2421 = vmatpush3.bf16.msra.mxu1 %v2420_v32  ;;  %v2532_v32 = vpack.c.bf16 %v1579_v31, %v1578_v30 }
 0x2d4   :  { %2422 = vmatprep.subr.bf16.mxu1 %v2565_v0 }
 0x2d6   :  { %v730_v40 = vpop.f32.mrb[6].mxu0 }
 0x2d7   :  { %v2043_v41 = vpop.f32.mrb[7].mxu0  ;;  %2424 = vmatpush3.bf16.msra.mxu1 %v2423_v35  ;;  %v731_v43 = vadd.f32 %v1493_v39, %v730_v40  ;;  %v2536_v35 = vpack.c.bf16 %v1581_v34, %v1580_v33 }
 0x2d8   :  { %2425 = vmatprep.subr.bf16.mxu1 %v2565_v0 }
 0x2d9   :  { %v734_v47 = vmax.f32 %v731_v43, 0.0 }
 0x2db   :  { %2427 = vmatpush3.bf16.msra.mxu1 %v2426_v42 }
 0x2dc   :  { %2452 = vmatprep.subr.bf16.mxu1 %v2565_v0 }
 0x2de   :  { %2077 = vmatmul.mubr.f32.vlgmr.msra.gmra.mrb[6].mxu1 %v734_v47 }
 0x2df   :  { %2454 = vmatpush3.bf16.msra.mxu1 %v2453_v46  ;;  %2146 = vmatprep.mubr.msk.f32.mxu1 %vm2566_vm0, %v2567_v4  ;;  %v1537_v4 = vld [vmem:[%s3362_s2 + $0x4b8] sm:$0xff] }
 0x2e0   :  { %2455 = vmatprep.subr.bf16.mxu1 %v2565_v0  ;;  %v2462_v56 = vpack.c.bf16 %v1537_v4, %v1536_v55 }
 0x2e3   :  { %2457 = vmatpush3.bf16.msra.mxu1 %v2456_v51 }
 0x2e4   :  { %2458 = vmatprep.subr.bf16.mxu1 %v2565_v0 }
 0x2e7   :  { %2460 = vmatpush3.bf16.msra.mxu1 %v2459_v54 }
 0x2e8   :  { %2461 = vmatprep.subr.bf16.mxu1 %v2565_v0 }
 0x2eb   :  { %2463 = vmatpush3.bf16.msra.mxu1 %v2462_v56 }
 0x2ec   :  { %2464 = vmatprep.subr.bf16.mxu1 %v2565_v0 }
 0x2ef   :  { %2466 = vmatpush3.bf16.msra.mxu1 %v2465_v59 }
 0x2f0   :  { %2467 = vmatprep.subr.bf16.mxu1 %v2565_v0 }
 0x2f3   :  { %2469 = vmatpush3.bf16.msra.mxu1 %v2468_v62 }
 0x2f4   :  { %2470 = vmatprep.subr.bf16.mxu1 %v2565_v0 }
 0x2f6   :  { %v922_v9 = vpop.f32.mrb[8].mxu0 }
 0x2f7   :  { %v923_v10 = vadd.f32 %v1529_v3, %v922_v9  ;;  %2472 = vmatpush3.bf16.msra.mxu1 %v2471_v2  ;;  %v2113_v11 = vpop.f32.mrb[9].mxu0 }
 0x2f8   :  { %2473 = vmatprep.subr.bf16.mxu1 %v2565_v0 }
 0x2f9   :  { %v926_v16 = vmax.f32 %v923_v10, 0.0 }
 0x2fb   :  { %2475 = vmatpush3.bf16.msra.mxu1 %v2474_v12 }
 0x2fc   :  { %2509 = vmatprep.subr.bf16.mxu1 %v2508_v13 }
 0x2fe   :  { %2147 = vmatmul.mubr.f32.vlgmr.msra.gmra.mrb[8].mxu1 %v926_v16 }
 0x2ff   :  { %2511 = vmatpush3.bf16.msra.mxu1 %v2508_v13 }
 0x300   :  { %2513 = vmatprep.subr.bf16.mxu1 %v2512_v17 }
 0x303   :  { %2515 = vmatpush3.bf16.msra.mxu1 %v2512_v17  ;;  %v1327_v17 = vlaneseq }
 0x304   :  { %2517 = vmatprep.subr.bf16.mxu1 %v2516_v20 }
 0x305   :  { %v1330_v18 = vshrl.u32 %v1327_v17, 7 }
 0x307   :  { %2519 = vmatpush3.bf16.msra.mxu1 %v2516_v20  ;;  %v1331_v19 = vmul.u32 16, %v1330_v18  ;;  %v3344_v20 = vand.u32 127, %v1327_v17 }
 0x308   :  { %2521 = vmatprep.subr.bf16.mxu1 %v2520_v23 }
 0x309   :  { %v1333_v21 = vadd.s32 15, %v1331_v19  ;;  %vm1332_vm4 = vcmp.ge.s32.totalorder %v3344_v20, %v1331_v19  ;;  %vm1367_vm9 = vcmp.eq.s32.totalorder %v3344_v20, 0  ;;  %vm1369_vm10 = vcmp.eq.s32.totalorder %v3344_v20, 1 }
 0x30b   :  { %2523 = vmatpush3.bf16.msra.mxu1 %v2520_v23  ;;  %vm1334_vm5 = vcmp.lt.s32.totalorder %v3344_v20, %v1333_v21 }
 0x30c   :  { %2525 = vmatprep.subr.bf16.mxu1 %v2524_v26  ;;  %vm1335_vm6 = vmand %vm1332_vm4, %vm1334_vm5 }
 0x30f   :  { %2527 = vmatpush3.bf16.msra.mxu1 %v2524_v26  ;;  %v624_v26 = vmul.f32 -0.5, %v2967_v50 }
 0x310   :  { %2529 = vmatprep.subr.bf16.mxu1 %v2528_v29 }
 0x311   :  { %v625_v27 = vsel %vm606_vm3, %v624_v26, 0.0 }
 0x313   :  { %2531 = vmatpush3.bf16.msra.mxu1 %v2528_v29 }
 0x314   :  { %2533 = vmatprep.subr.bf16.mxu1 %v2532_v32 }
 0x316   :  { %v2183_v38 = vpop.f32.mrb[10].mxu0 }
 0x317   :  { %v1114_v39 = vpop.f32.mrb[11].mxu0  ;;  %2535 = vmatpush3.bf16.msra.mxu1 %v2532_v32  ;;  %v1120_v40 = vadd.f32 %v2183_v38, %v1565_v36 }
 0x318   :  { %v1115_v41 = vadd.f32 %v1565_v36, %v1114_v39  ;;  %2537 = vmatprep.subr.bf16.mxu1 %v2536_v35 }
 0x319   :  { %v1134_v46 = vmax.f32 %v1120_v40, 0.0 }
 0x31a   :  { %v1133_v42 = vmax.f32 %v1115_v41, 0.0  ;;  %v2186_v43 = vpop.f32.mrb[12].mxu0 }
 0x31b   :  { %2539 = vmatpush3.bf16.msra.mxu1 %v2536_v35  ;;  %v1130_v44 = vadd.f32 %v2186_v43, %v1565_v36  ;;  %v1124_v45 = vpop.f32.mrb[13].mxu0 }
 0x31c   :  { %2219 = vmatprep.mubr.f32.mxu1 %v1133_v42  ;;  %v1125_v47 = vadd.f32 %v1565_v36, %v1124_v45 }
 0x31d   :  { %v1136_v48 = vmax.f32 %v1130_v44, 0.0 }
 0x31e   :  { %v1135_v49 = vmax.f32 %v1125_v47, 0.0  ;;  %2220 = vmatmul.mubr.f32.vlgmr.msra.gmra.mrb[10].mxu1 %v1134_v46 }
 0x320   :  { %2222 = vmatprep.mubr.f32.mxu1 %v1135_v49 }
 0x322   :  { %2223 = vmatmul.mubr.f32.gmra.mrb[12].mxu1 %v1136_v48 }
 0x391   :  { %v599_v51 = vpop.f32.mrb[4].mxu1 }
 0x392   :  { %v2008_v52 = vpop.f32.mrb[5].mxu1  ;;  %v600_v30 = vadd.f32 %v1475_v28, %v599_v51 }
 0x394   :  { %2557 = vtanh.f32 %v600_v30 }
 0x39e   :  { %v2558_v36 = vpop.eup %2557 }
 0x39f   :  { %v604_v50 = vsub.f32 %v2558_v36, %v3087_v37 }
 0x3a1   :  { %v605_v40 = vmul.f32 %v604_v50, %v604_v50 }
 0x3a3   :  { %v607_v41 = vsel %vm606_vm3, %v605_v40, 0.0 }
 0x3b1   :  { %v826_v54 = vpop.f32.mrb[6].mxu1 }
 0x3b2   :  { %v827_v55 = vadd.f32 %v1511_v53, %v826_v54  ;;  %v2078_v4 = vpop.f32.mrb[7].mxu1 }
 0x3b4   :  { %v830_v56 = vmax.f32 %v827_v55, 0.0 }
 0x3b6   :  { %1374 = vst [vmem:[%s3366_s5] sm:$0x3] %v830_v56 }
 0x3d1   :  { %v1018_v58 = vpop.f32.mrb[8].mxu1 }
 0x3d2   :  { %v1019_v59 = vadd.f32 %v1547_v57, %v1018_v58  ;;  %v2148_v60 = vpop.f32.mrb[9].mxu1 }
 0x3d4   :  { %v1022_v61 = vmax.f32 %v1019_v59, 0.0 }
 0x3d6   :  { %v1251_v62 = vmul.f32 %v1022_v61, %v830_v56 }
 0x3d8   :  { %v1252_v63 = vsel %vm606_vm3, %v1251_v62, 0.0 }
 0x3d9   :  { %1253 = vadd.xlane.f32.xlu0 %v1252_v63 }
 0x3f1   :  { %v2221_v2 = vpop.f32.mrb[10].mxu1 }
 0x3f2   :  { %v1234_v3 = vadd.f32 %v2221_v2, %v1583_v1  ;;  %v1228_v5 = vpop.f32.mrb[11].mxu1 }
 0x3f3   :  { %v1229_v6 = vadd.f32 %v1583_v1, %v1228_v5 }
 0x3f4   :  { %v1248_v7 = vmax.f32 %v1234_v3, 0.0 }
 0x3f5   :  { %v1247_v8 = vmax.f32 %v1229_v6, 0.0  ;;  %v2224_v9 = vpop.f32.mrb[12].mxu1 }
 0x3f6   :  { %v1244_v10 = vadd.f32 %v2224_v9, %v1583_v1  ;;  %v1238_v11 = vpop.f32.mrb[13].mxu1 }
 0x3f7   :  { %v2541_v12 = vpack.c.bf16 %v1248_v7, %v1247_v8  ;;  %v1239_v13 = vadd.f32 %v1583_v1, %v1238_v11 }
 0x3f8   :  { %v1250_v14 = vmax.f32 %v1244_v10, 0.0 }
 0x3f9   :  { %v1249_v15 = vmax.f32 %v1239_v13, 0.0  ;;  %2542 = vmatpush3.bf16.xpose.msra.mxu0 %v2541_v12 }
 0x3fa   :  { %2543 = vmatprep.subr.bf16.mxu0 %v2565_v0 }
 0x3fb   :  { %v2544_v16 = vpack.c.bf16 %v1250_v14, %v1249_v15 }
 0x401   :  { %2545 = vmatpush3.bf16.xpose.msra.mxu0 %v2544_v16 }
 0x408   :  { %2234 = vmatmul.mubr.f32.vlgmr.msra.gmra.mrb[14].mxu0 %v830_v56 }
 0x466   :  { %v1254_v29 = vpop.xlane.xlu0 %1253 }
 0x467   :  { %v1255_v31 = vmul.f32 14.285714, %v1254_v29 }
 0x4db   :  { %v1322_v22 = vpop.f32.mrb[14].mxu0 }
 0x4dc   :  { %v1326_v23 = vmul.f32 14.285714, %v1322_v22  ;;  %v2235_v24 = vpop.f32.mrb[15].mxu0 }
 0x4de   :  { %v1336_v25 = vsel %vm1335_vm6, %v1326_v23, -1e+30 }
 0x4df   :  { %v1338_v0 = vsel %vm1337_vm7, %v1336_v25, -inf }
 0x4e0   :  { %1339 = vmax.xlane.f32.xlu0 %v1338_v0 }
 0x4e4   :  { %626 = vadd.xlane.f32.xlu0 %v625_v27 }
 0x56d   :  { %v1340_v32 = vpop.xlane.xlu0 %1339 }
 0x56e   :  { %v1341_v33 = vmax.f32 %v1255_v31, %v1340_v32 }
 0x570   :  { %v1345_v34 = vsub.f32 %v1336_v25, %v1341_v33  ;;  %v1342_v42 = vsub.f32 %v1255_v31, %v1341_v33 }
 0x571   :  { %v627_v44 = vpop.xlane.xlu0 %626 }
 0x572   :  { %v1346_v35 = vmul.f32 1.442695, %v1345_v34  ;;  %v1343_v43 = vmul.f32 1.442695, %v1342_v42  ;;  %v628_v45 = vrot.slane %v627_v44, 4 }
 0x574   :  { %2559 = vpow2.f32 %v1346_v35  ;;  %v629_v47 = vadd.f32 %v628_v45, %v627_v44 }
 0x575   :  { %2561 = vpow2.f32 %v1343_v43 }
 0x576   :  { %v630_v51 = vrot.slane %v629_v47, 2 }
 0x578   :  { %v631_v54 = vadd.f32 %v630_v51, %v629_v47 }
 0x57a   :  { %v632_v56 = vrot.slane %v631_v54, 1 }
 0x57c   :  { %v633_v61 = vadd.f32 %v632_v56, %v631_v54 }
 0x57e   :  { %v2560_v38 = vpop.eup %2559 }
 0x57f   :  { %v1348_v39 = vsel %vm1337_vm7, %v2560_v38, 0.0  ;;  %v2562_v46 = vpop.eup %2561 }
 0x580   :  { %1349 = vadd.xlane.f32.xlu1 %v1348_v39 }
 0x584   :  { %608 = vadd.xlane.f32.xlu1 %v607_v41 }
 0x60d   :  { %v1350_v48 = vpop.xlane.xlu1 %1349 }
 0x60e   :  { %v1351_v49 = vadd.f32 %v2562_v46, %v1350_v48 }
 0x610   :  { %2563 = vlog2.f32 %v1351_v49 }
 0x611   :  { %v609_v37 = vpop.xlane.xlu1 %608 }
 0x612   :  { %v610_v52 = vrot.slane %v609_v37, 4 }
 0x614   :  { %v611_v53 = vadd.f32 %v610_v52, %v609_v37 }
 0x616   :  { %v612_v55 = vrot.slane %v611_v53, 2 }
 0x618   :  { %v613_v4 = vadd.f32 %v612_v55, %v611_v53 }
 0x61a   :  { %v2564_v57 = vpop.eup %2563  ;;  %v614_v58 = vrot.slane %v613_v4, 1 }
 0x61b   :  { %v1353_v59 = vmul.f32 0.6931472, %v2564_v57 }
 0x61c   :  { %v615_v60 = vadd.f32 %v614_v58, %v613_v4 }
 0x61d   :  { %v1354_v62 = vadd.f32 %v1353_v59, %v1341_v33 }
 0x61e   :  { %2546 = vpush %v615_v60 }
 0x61f   :  { %2548 = vpush %v633_v61  ;;  %v1355_v63 = vsub.f32 %v1354_v62, %v1255_v31 }
 0x621   :  { %v1357_v1 = vsel %vm1356_vm8, %v1355_v63, 0.0 }
 0x622   :  { %1358 = vadd.xlane.f32.xlu1 %v1357_v1 }
 0x64f   :  { %s2547_s3 = spop %2546 }
 0x650   :  { %s2549_s7 = spop %2548  ;;  %v617_v10 = vstv %s2547_s3 }
 0x651   :  { %v635_v11 = vstv %s2549_s7 }
 0x652   :  { %v636_v12 = vadd.f32 %v635_v11, %v617_v10 }
 0x654   :  { %v1368_v14 = vsel %vm1367_vm9, %v636_v12, 0.0 }
 0x6af   :  { %v1359_v2 = vpop.xlane.xlu1 %1358 }
 0x6b0   :  { %v1360_v3 = vrot.slane %v1359_v2, 4 }
 0x6b2   :  { %v1361_v5 = vadd.f32 %v1360_v3, %v1359_v2 }
 0x6b4   :  { %v1362_v6 = vrot.slane %v1361_v5, 2 }
 0x6b6   :  { %v1363_v7 = vadd.f32 %v1362_v6, %v1361_v5 }
 0x6b8   :  { %v1364_v8 = vrot.slane %v1363_v7, 1 }
 0x6ba   :  { %v1365_v9 = vadd.f32 %v1364_v8, %v1363_v7 }
 0x6bc   :  { %2550 = vpush %v1365_v9 }
 0x6ed   :  { %s2551_s8 = spop %2550 }
 0x6ee   :  { %v1370_v13 = vstv %s2551_s8 }
 0x6ef   :  { %v1371_v15 = vsel %vm1369_vm10, %v1370_v13, 0.0 }
 0x6f0   :  { %v1372_v16 = vadd.f32 %v1371_v15, %v1368_v14 }
 0x6f2   :  { %1373 = vst [vmem:[%s3367_s4] sm:$0x1] %v1372_v16 }

</bundles_post_ra>
